<compile_context>
chip_gen: v7x
topology: tpu7x:2x2x1
jax: 0.10.0
libtpu: 0.0.40
codegen_flags: <defaults>
</compile_context>

<pallas_src>
import math

import jax
import jax.numpy as jnp
from jax import lax
from jax.experimental import pallas as pl
from jax.experimental.pallas import tpu as pltpu

# ---------------- small BERT-like config ----------------
VOCAB = 64      # vocab size
SEQ = 8         # sequence length (CLS + 6 chars + SEP)
HIDDEN = 32     # hidden size
NHEADS = 4      # attention heads
HEAD = HIDDEN // NHEADS
FFN = 64        # intermediate (feed-forward) size
NLAYERS = 2     # encoder layers
LN_EPS = 1e-12  # BERT layer-norm epsilon

# ---- packed embedding slab rows: [word(64) | pos+type0(8) | ln_g | ln_b] ----
EMB_POS = VOCAB                  # 64
EMB_LN_G = VOCAB + SEQ           # 72 (8-aligned)
EMB_LN_B = EMB_LN_G + 1          # 73
EMB_ROWS = EMB_LN_B + 1          # 74

# ---- packed per-layer slab: rows 0:32 weight rows, rows 32:40 vectors ----
L_WIDTH = 4 * HIDDEN + 2 * FFN   # 256 = wqkv(96) | wo(32) | wi(64) | wp^T(64)
C_QKV = 0
C_WO = 3 * HIDDEN                # 96
C_WI = 4 * HIDDEN                # 128
C_WP = 4 * HIDDEN + FFN          # 192
VROW = HIDDEN                    # bias / LN vector rows start here
L_ROWS = HIDDEN + 8              # 40


def _ln(x, g, b):
    mu = jnp.mean(x, axis=-1, keepdims=True)
    var = jnp.mean(jnp.square(x - mu), axis=-1, keepdims=True)
    return (x - mu) * lax.rsqrt(var + LN_EPS) * g + b


# ---------------- single fused kernel ----------------
def fused_encoder_kernel(ids_ref, emb_ref, layers_ref, o_ref):
    ids = ids_ref[...]                                         # (SEQ, 1) int32

    # ---- one-hot MXU gather: (8,64) @ (64,32) ----
    vocab_iota = lax.broadcasted_iota(jnp.int32, (SEQ, VOCAB), 1)
    onehot = (vocab_iota == ids).astype(jnp.float32)           # (SEQ, VOCAB)
    x = jnp.dot(onehot, emb_ref[0:VOCAB, :],
                preferred_element_type=jnp.float32)            # word embeddings
    x = x + emb_ref[EMB_POS:EMB_POS + SEQ, :]                  # + pos + type0
    x = _ln(x, emb_ref[EMB_LN_G:EMB_LN_G + 1, :],
            emb_ref[EMB_LN_B:EMB_LN_B + 1, :])

    # ---- additive PAD-key mask from ids (HF attention_mask semantics) ----
    # pad_sel @ onehot^T puts the per-token "is PAD" flag on the key/lane axis.
    pad_sel = (vocab_iota == 0).astype(jnp.float32)            # (SEQ, VOCAB)
    mask_bias = -1e9 * lax.dot_general(
        pad_sel, onehot, (((1,), (1,)), ((), ())),
        preferred_element_type=jnp.float32)                    # (SEQ_q, SEQ_k)

    # Per-head lane masks (hoisted outside layer/head loops).
    lane = lax.broadcasted_iota(jnp.int32, (SEQ, HIDDEN), 1)
    head_masks = [(lane >= h * HEAD) & (lane < (h + 1) * HEAD)
                  for h in range(NHEADS)]
    scale = 1.0 / math.sqrt(HEAD)

    for li in range(NLAYERS):                                  # static unroll
        W = layers_ref[li]                                     # (40, 256)
        wqkv = W[0:HIDDEN, C_QKV:C_QKV + 3 * HIDDEN]           # (32, 96)
        wo = W[0:HIDDEN, C_WO:C_WO + HIDDEN]                   # (32, 32)
        wi = W[0:HIDDEN, C_WI:C_WI + FFN]                      # (32, 64)
        wpT = W[0:HIDDEN, C_WP:C_WP + FFN]                     # (32, 64) = wp^T
        bqkv = W[VROW + 0:VROW + 1, 0:3 * HIDDEN]
        bo = W[VROW + 1:VROW + 2, 0:HIDDEN]
        ln1g = W[VROW + 2:VROW + 3, 0:HIDDEN]
        ln1b = W[VROW + 3:VROW + 4, 0:HIDDEN]
        bi = W[VROW + 4:VROW + 5, 0:FFN]
        bp = W[VROW + 5:VROW + 6, 0:HIDDEN]
        ln2g = W[VROW + 6:VROW + 7, 0:HIDDEN]
        ln2b = W[VROW + 7:VROW + 8, 0:HIDDEN]

        # fused Q/K/V projection: one (8,32) x (32,96) matmul
        qkv = jnp.dot(x, wqkv, preferred_element_type=jnp.float32) + bqkv
        q = qkv[:, 0:HIDDEN]
        k = qkv[:, HIDDEN:2 * HIDDEN]
        v = qkv[:, 2 * HIDDEN:3 * HIDDEN]

        # multi-head attention: lane-masked full-width matmuls accumulate the
        # 4 head contexts into ONE (8,32) ctx buffer -> single Wo matmul.
        ctx = jnp.zeros((SEQ, HIDDEN), jnp.float32)
        for h in range(NHEADS):                                # static unroll
            hm = head_masks[h]
            qh = jnp.where(hm, q, 0.0)                         # zero other heads
            s_h = lax.dot_general(qh, k, (((1,), (1,)), ((), ())),
                                  preferred_element_type=jnp.float32) * scale
            s_h = s_h + mask_bias
            s_h = s_h - jnp.max(s_h, axis=-1, keepdims=True)
            p = jnp.exp(s_h)
            p = p * pl.reciprocal(jnp.sum(p, axis=-1, keepdims=True),
                                  approx=True)
            vh = jnp.where(hm, v, 0.0)
            ctx = ctx + jnp.dot(p, vh, preferred_element_type=jnp.float32)
        attn = jnp.dot(ctx, wo, preferred_element_type=jnp.float32) + bo

        h1 = _ln(x + attn, ln1g, ln1b)
        ff = jnp.dot(h1, wi, preferred_element_type=jnp.float32) + bi
        # TODO(synk): HF BERT uses exact erf-GELU; tanh approximation used for TPU lowering.
        ff = jax.nn.gelu(ff, approximate=True)
        ff = lax.dot_general(ff, wpT, (((1,), (1,)), ((), ())),
                             preferred_element_type=jnp.float32) + bp
        x = _ln(h1 + ff, ln2g, ln2b)

    # only the CLS row is consumed downstream
    o_ref[...] = x[0:1, :]


# ---------------- wrapper ----------------
def _full_spec(shape):
    nd = len(shape)
    return pl.BlockSpec(shape, lambda i, _nd=nd: (0,) * _nd)


def fused_text_encoder(ids2d, params):
    emb = params["emb"]          # (74, 32)
    layers = params["layers"]    # (NLAYERS, 40, 256)

    flops = (2 * SEQ * VOCAB * HIDDEN                       # one-hot gather
             + 2 * SEQ * VOCAB * SEQ                        # pad-mask matmul
             + NLAYERS * 2 * (SEQ * HIDDEN * 3 * HIDDEN     # fused QKV proj
                              + NHEADS * 2 * SEQ * SEQ * HIDDEN  # scores + ctx
                              + SEQ * HIDDEN * HIDDEN       # output proj
                              + 2 * SEQ * HIDDEN * FFN))    # FFN in + out
    transcendentals = NLAYERS * (NHEADS * SEQ * SEQ + SEQ * FFN)
    bytes_accessed = 4 * (ids2d.size + emb.size + layers.size + HIDDEN)

    # TODO(synk): to use v7x's second TensorCore / the 256x256 MXU efficiently,
    # batch multiple texts on a leading 'parallel' grid axis; single-text is
    # launch/DMA-latency bound by construction.
    return pl.pallas_call(
        fused_encoder_kernel,
        out_shape=jax.ShapeDtypeStruct((1, HIDDEN), jnp.float32),
        grid=(1,),
        in_specs=[_full_spec(ids2d.shape), _full_spec(emb.shape),
                  _full_spec(layers.shape)],
        out_specs=_full_spec((1, HIDDEN)),
        compiler_params=pltpu.CompilerParams(
            dimension_semantics=("arbitrary",)),
        cost_estimate=pl.CostEstimate(flops=flops,
                                      transcendentals=transcendentals,
                                      bytes_accessed=bytes_accessed),
    )(ids2d, emb, layers)


# ---------------- deterministic parameter init (3 packed slabs) ----------------
def init_params(key):
    std = 0.02

    def nrm(k, shape):
        return std * jax.random.normal(k, shape, jnp.float32)

    keys = jax.random.split(key, 3 + NLAYERS)
    word_emb = nrm(keys[0], (VOCAB, HIDDEN))
    pos_emb = nrm(keys[1], (SEQ, HIDDEN))
    type_emb = nrm(keys[2], (2, HIDDEN))

    # embedding slab: [word | pos+type0 | emb-LN gamma | emb-LN beta]
    emb_slab = jnp.concatenate([
        word_emb,
        pos_emb + type_emb[0][None, :],           # token_type_ids = 0
        jnp.ones((1, HIDDEN), jnp.float32),
        jnp.zeros((1, HIDDEN), jnp.float32),
    ], axis=0)                                     # (EMB_ROWS, HIDDEN)
    assert emb_slab.shape == (EMB_ROWS, HIDDEN)

    def vrow(v):
        return jnp.pad(v, (0, L_WIDTH - v.shape[0]))[None, :]

    layer_slabs = []
    for li in range(NLAYERS):
        lk = jax.random.split(keys[3 + li], 6)
        wq = nrm(lk[0], (HIDDEN, HIDDEN))
        wk = nrm(lk[1], (HIDDEN, HIDDEN))
        wv = nrm(lk[2], (HIDDEN, HIDDEN))
        wo = nrm(lk[3], (HIDDEN, HIDDEN))
        wi = nrm(lk[4], (HIDDEN, FFN))
        wp = nrm(lk[5], (FFN, HIDDEN))
        wrows = jnp.concatenate([wq, wk, wv, wo, wi, wp.T], axis=1)  # (32,256)
        vrows = jnp.concatenate([
            vrow(jnp.zeros((3 * HIDDEN,), jnp.float32)),  # bqkv
            vrow(jnp.zeros((HIDDEN,), jnp.float32)),      # bo
            vrow(jnp.ones((HIDDEN,), jnp.float32)),       # ln1 gamma
            vrow(jnp.zeros((HIDDEN,), jnp.float32)),      # ln1 beta
            vrow(jnp.zeros((FFN,), jnp.float32)),         # bi
            vrow(jnp.zeros((HIDDEN,), jnp.float32)),      # bp
            vrow(jnp.ones((HIDDEN,), jnp.float32)),       # ln2 gamma
            vrow(jnp.zeros((HIDDEN,), jnp.float32)),      # ln2 beta
        ], axis=0)                                         # (8, 256)
        layer_slabs.append(jnp.concatenate([wrows, vrows], axis=0))  # (40,256)

    layers = jnp.stack(layer_slabs)                        # (NLAYERS, 40, 256)
    assert layers.shape == (NLAYERS, L_ROWS, L_WIDTH)
    return {"emb": emb_slab, "layers": layers}


# ---------------- "TextEncoder.forward" ----------------
def tokenize(text):
    # TODO(synk): no Pallas/JAX equivalent of the HF AutoTokenizer; token ids
    # are synthesized deterministically: [CLS] + char ids + [SEP] + [PAD]*.
    ids = [2]                                    # [CLS]
    for ch in text[: SEQ - 2]:
        ids.append(4 + (ord(ch) % (VOCAB - 4)))
    ids.append(3)                                # [SEP]
    while len(ids) < SEQ:
        ids.append(0)                            # [PAD]
    return jnp.array(ids[:SEQ], dtype=jnp.int32).reshape(SEQ, 1)


def text_encoder_forward(text, params):
    ids2d = tokenize(text)
    h = fused_text_encoder(ids2d, params)        # (1, HIDDEN) — CLS row only
    # last_hidden_state[:, 0].squeeze(0) -> CLS embedding of shape (HIDDEN,)
    return h[0]


if __name__ == "__main__":
    params = init_params(jax.random.PRNGKey(0))
    text = "pallas"  # 6 chars -> exactly fills SEQ=8 with CLS/SEP, no padding
    cls = text_encoder_forward(text, params)
    cls = jax.block_until_ready(cls)
    assert cls.shape == (HIDDEN,) and cls.dtype == jnp.float32
    assert bool(jnp.all(jnp.isfinite(cls)))
    print("KERNEL_OK")
</pallas_src>

<mosaic_0001>
module attributes {stable_mosaic.version = 11 : i64} {
  func.func @fused_encoder_kernel(%arg0: i32, %arg1: memref<8x1xi32, #tpu.memory_space<vmem>>, %arg2: memref<74x32xf32, #tpu.memory_space<vmem>>, %arg3: memref<2x40x256xf32, #tpu.memory_space<vmem>>, %arg4: memref<1x32xf32, #tpu.memory_space<vmem>>) attributes {dimension_semantics = [#tpu.dimension_semantics<arbitrary>], iteration_bounds = array<i64: 1>, scalar_prefetch = 0 : i64, scratch_operands = 0 : i64, tpu.core_type = #tpu.core_type<tc>, window_params = [{pipeline_mode = #tpu.pipeline_mode<synchronous>, transform_indices = @transform_0, window_bounds = array<i64: 8, 1>}, {pipeline_mode = #tpu.pipeline_mode<synchronous>, transform_indices = @transform_1, window_bounds = array<i64: 74, 32>}, {pipeline_mode = #tpu.pipeline_mode<synchronous>, transform_indices = @transform_2, window_bounds = array<i64: 2, 40, 256>}, {pipeline_mode = #tpu.pipeline_mode<synchronous>, transform_indices = @transform_3, window_bounds = array<i64: 1, 32>}]} {
    %c0 = arith.constant 0 : index
    %c0_0 = arith.constant 0 : index
    %0 = vector.load %arg1[%c0, %c0_0] : memref<8x1xi32, #tpu.memory_space<vmem>>, vector<8x1xi32>
    %1 = tpu.iota {dimensions = array<i32: 1>} : vector<8x64xi32>
    %2 = vector.broadcast %0 : vector<8x1xi32> to vector<8x64xi32>
    %3 = arith.cmpi eq, %1, %2 : vector<8x64xi32>
    %4 = arith.extui %3 : vector<8x64xi1> to vector<8x64xi32>
    %5 = arith.sitofp %4 : vector<8x64xi32> to vector<8x64xf32>
    %c0_1 = arith.constant 0 : index
    %c0_2 = arith.constant 0 : index
    %6 = vector.load %arg2[%c0_1, %c0_2] : memref<74x32xf32, #tpu.memory_space<vmem>>, vector<64x32xf32>
    %cst = arith.constant dense<0.000000e+00> : vector<8x32xf32>
    %7 = tpu.matmul %5, %6, %cst {dimension_numbers = #tpu.dot_dimension_numbers<[1], [0], [0], [1], [0, 0, 1, 1], [], []>} : vector<8x64xf32>, vector<64x32xf32>, vector<8x32xf32> -> vector<8x32xf32>
    %c64 = arith.constant 64 : index
    %c0_3 = arith.constant 0 : index
    %8 = vector.load %arg2[%c64, %c0_3] : memref<74x32xf32, #tpu.memory_space<vmem>>, vector<8x32xf32>
    %9 = arith.addf %7, %8 : vector<8x32xf32>
    %c72 = arith.constant 72 : index
    %c0_4 = arith.constant 0 : index
    %10 = vector.load %arg2[%c72, %c0_4] : memref<74x32xf32, #tpu.memory_space<vmem>>, vector<1x32xf32>
    %c73 = arith.constant 73 : index
    %c0_5 = arith.constant 0 : index
    %11 = vector.load %arg2[%c73, %c0_5] : memref<74x32xf32, #tpu.memory_space<vmem>>, vector<1x32xf32>
    %cst_6 = arith.constant dense<0.000000e+00> : vector<8xf32>
    %12 = vector.multi_reduction <add>, %9, %cst_6 [1] : vector<8x32xf32> to vector<8xf32>
    %13 = vector.shape_cast %12 : vector<8xf32> to vector<8x1xf32>
    %cst_7 = arith.constant 3.200000e+01 : f32
    %14 = vector.broadcast %cst_7 : f32 to vector<8x1xf32>
    %15 = arith.divf %13, %14 : vector<8x1xf32>
    %16 = vector.broadcast %15 : vector<8x1xf32> to vector<8x32xf32>
    %17 = arith.subf %9, %16 : vector<8x32xf32>
    %18 = arith.mulf %17, %17 : vector<8x32xf32>
    %cst_8 = arith.constant dense<0.000000e+00> : vector<8xf32>
    %19 = vector.multi_reduction <add>, %18, %cst_8 [1] : vector<8x32xf32> to vector<8xf32>
    %20 = vector.shape_cast %19 : vector<8xf32> to vector<8x1xf32>
    %cst_9 = arith.constant 3.200000e+01 : f32
    %21 = vector.broadcast %cst_9 : f32 to vector<8x1xf32>
    %22 = arith.divf %20, %21 : vector<8x1xf32>
    %23 = vector.broadcast %15 : vector<8x1xf32> to vector<8x32xf32>
    %24 = arith.subf %9, %23 : vector<8x32xf32>
    %cst_10 = arith.constant 9.99999996E-13 : f32
    %25 = vector.broadcast %cst_10 : f32 to vector<8x1xf32>
    %26 = arith.addf %22, %25 : vector<8x1xf32>
    %27 = math.rsqrt %26 : vector<8x1xf32>
    %28 = vector.broadcast %27 : vector<8x1xf32> to vector<8x32xf32>
    %29 = arith.mulf %24, %28 : vector<8x32xf32>
    %30 = vector.broadcast %10 : vector<1x32xf32> to vector<8x32xf32>
    %31 = arith.mulf %29, %30 : vector<8x32xf32>
    %32 = vector.broadcast %11 : vector<1x32xf32> to vector<8x32xf32>
    %33 = arith.addf %31, %32 : vector<8x32xf32>
    %c0_i32 = arith.constant 0 : i32
    %34 = vector.broadcast %c0_i32 : i32 to vector<8x64xi32>
    %35 = arith.cmpi eq, %1, %34 : vector<8x64xi32>
    %36 = arith.extui %35 : vector<8x64xi1> to vector<8x64xi32>
    %37 = arith.sitofp %36 : vector<8x64xi32> to vector<8x64xf32>
    %cst_11 = arith.constant dense<0.000000e+00> : vector<8x8xf32>
    %38 = tpu.matmul %37, %5, %cst_11 {dimension_numbers = #tpu.dot_dimension_numbers<[1], [1], [0], [0], [0, 0, 1, 0], [], []>} : vector<8x64xf32>, vector<8x64xf32>, vector<8x8xf32> -> vector<8x8xf32>
    %cst_12 = arith.constant -1.000000e+09 : f32
    %39 = vector.broadcast %cst_12 : f32 to vector<8x8xf32>
    %40 = arith.mulf %39, %38 : vector<8x8xf32>
    %41 = tpu.iota {dimensions = array<i32: 1>} : vector<8x32xi32>
    %c0_i32_13 = arith.constant 0 : i32
    %42 = vector.broadcast %c0_i32_13 : i32 to vector<8x32xi32>
    %43 = arith.cmpi sge, %41, %42 : vector<8x32xi32>
    %c8_i32 = arith.constant 8 : i32
    %44 = vector.broadcast %c8_i32 : i32 to vector<8x32xi32>
    %45 = arith.cmpi slt, %41, %44 : vector<8x32xi32>
    %46 = arith.andi %43, %45 : vector<8x32xi1>
    %c8_i32_14 = arith.constant 8 : i32
    %47 = vector.broadcast %c8_i32_14 : i32 to vector<8x32xi32>
    %48 = arith.cmpi sge, %41, %47 : vector<8x32xi32>
    %c16_i32 = arith.constant 16 : i32
    %49 = vector.broadcast %c16_i32 : i32 to vector<8x32xi32>
    %50 = arith.cmpi slt, %41, %49 : vector<8x32xi32>
    %51 = arith.andi %48, %50 : vector<8x32xi1>
    %c16_i32_15 = arith.constant 16 : i32
    %52 = vector.broadcast %c16_i32_15 : i32 to vector<8x32xi32>
    %53 = arith.cmpi sge, %41, %52 : vector<8x32xi32>
    %c24_i32 = arith.constant 24 : i32
    %54 = vector.broadcast %c24_i32 : i32 to vector<8x32xi32>
    %55 = arith.cmpi slt, %41, %54 : vector<8x32xi32>
    %56 = arith.andi %53, %55 : vector<8x32xi1>
    %c24_i32_16 = arith.constant 24 : i32
    %57 = vector.broadcast %c24_i32_16 : i32 to vector<8x32xi32>
    %58 = arith.cmpi sge, %41, %57 : vector<8x32xi32>
    %c32_i32 = arith.constant 32 : i32
    %59 = vector.broadcast %c32_i32 : i32 to vector<8x32xi32>
    %60 = arith.cmpi slt, %41, %59 : vector<8x32xi32>
    %61 = arith.andi %58, %60 : vector<8x32xi1>
    %c0_17 = arith.constant 0 : index
    %c0_18 = arith.constant 0 : index
    %c0_19 = arith.constant 0 : index
    %62 = vector.load %arg3[%c0_17, %c0_18, %c0_19] : memref<2x40x256xf32, #tpu.memory_space<vmem>>, vector<1x40x256xf32>
    %63 = vector.shape_cast %62 : vector<1x40x256xf32> to vector<40x256xf32>
    %64 = vector.extract_strided_slice %63 {offsets = [0, 0], sizes = [32, 96], strides = [1, 1]} : vector<40x256xf32> to vector<32x96xf32>
    %65 = vector.extract_strided_slice %63 {offsets = [0, 96], sizes = [32, 32], strides = [1, 1]} : vector<40x256xf32> to vector<32x32xf32>
    %66 = vector.extract_strided_slice %63 {offsets = [0, 128], sizes = [32, 64], strides = [1, 1]} : vector<40x256xf32> to vector<32x64xf32>
    %67 = vector.extract_strided_slice %63 {offsets = [0, 192], sizes = [32, 64], strides = [1, 1]} : vector<40x256xf32> to vector<32x64xf32>
    %68 = vector.extract_strided_slice %63 {offsets = [32, 0], sizes = [1, 96], strides = [1, 1]} : vector<40x256xf32> to vector<1x96xf32>
    %69 = vector.extract_strided_slice %63 {offsets = [33, 0], sizes = [1, 32], strides = [1, 1]} : vector<40x256xf32> to vector<1x32xf32>
    %70 = vector.extract_strided_slice %63 {offsets = [34, 0], sizes = [1, 32], strides = [1, 1]} : vector<40x256xf32> to vector<1x32xf32>
    %71 = vector.extract_strided_slice %63 {offsets = [35, 0], sizes = [1, 32], strides = [1, 1]} : vector<40x256xf32> to vector<1x32xf32>
    %72 = vector.extract_strided_slice %63 {offsets = [36, 0], sizes = [1, 64], strides = [1, 1]} : vector<40x256xf32> to vector<1x64xf32>
    %73 = vector.extract_strided_slice %63 {offsets = [37, 0], sizes = [1, 32], strides = [1, 1]} : vector<40x256xf32> to vector<1x32xf32>
    %74 = vector.extract_strided_slice %63 {offsets = [38, 0], sizes = [1, 32], strides = [1, 1]} : vector<40x256xf32> to vector<1x32xf32>
    %75 = vector.extract_strided_slice %63 {offsets = [39, 0], sizes = [1, 32], strides = [1, 1]} : vector<40x256xf32> to vector<1x32xf32>
    %cst_20 = arith.constant dense<0.000000e+00> : vector<8x96xf32>
    %76 = tpu.matmul %33, %64, %cst_20 {dimension_numbers = #tpu.dot_dimension_numbers<[1], [0], [0], [1], [0, 0, 1, 1], [], []>} : vector<8x32xf32>, vector<32x96xf32>, vector<8x96xf32> -> vector<8x96xf32>
    %77 = vector.broadcast %68 : vector<1x96xf32> to vector<8x96xf32>
    %78 = arith.addf %76, %77 : vector<8x96xf32>
    %79 = vector.extract_strided_slice %78 {offsets = [0, 0], sizes = [8, 32], strides = [1, 1]} : vector<8x96xf32> to vector<8x32xf32>
    %80 = vector.extract_strided_slice %78 {offsets = [0, 32], sizes = [8, 32], strides = [1, 1]} : vector<8x96xf32> to vector<8x32xf32>
    %81 = vector.extract_strided_slice %78 {offsets = [0, 64], sizes = [8, 32], strides = [1, 1]} : vector<8x96xf32> to vector<8x32xf32>
    %cst_21 = arith.constant 0.000000e+00 : f32
    %82 = vector.broadcast %cst_21 : f32 to vector<8x32xf32>
    %cst_22 = arith.constant 0.000000e+00 : f32
    %83 = vector.broadcast %cst_22 : f32 to vector<8x32xf32>
    %84 = arith.select %46, %79, %83 : vector<8x32xi1>, vector<8x32xf32>
    %cst_23 = arith.constant dense<0.000000e+00> : vector<8x8xf32>
    %85 = tpu.matmul %84, %80, %cst_23 {dimension_numbers = #tpu.dot_dimension_numbers<[1], [1], [0], [0], [0, 0, 1, 0], [], []>} : vector<8x32xf32>, vector<8x32xf32>, vector<8x8xf32> -> vector<8x8xf32>
    %cst_24 = arith.constant 0.353553385 : f32
    %86 = vector.broadcast %cst_24 : f32 to vector<8x8xf32>
    %87 = arith.mulf %85, %86 : vector<8x8xf32>
    %88 = arith.addf %87, %40 : vector<8x8xf32>
    %cst_25 = arith.constant dense<0xFF800000> : vector<8xf32>
    %89 = vector.multi_reduction <maximumf>, %88, %cst_25 [1] : vector<8x8xf32> to vector<8xf32>
    %90 = vector.shape_cast %89 : vector<8xf32> to vector<8x1xf32>
    %91 = vector.broadcast %90 : vector<8x1xf32> to vector<8x8xf32>
    %92 = arith.subf %88, %91 : vector<8x8xf32>
    %93 = math.exp %92 : vector<8x8xf32>
    %cst_26 = arith.constant dense<0.000000e+00> : vector<8xf32>
    %94 = vector.multi_reduction <add>, %93, %cst_26 [1] : vector<8x8xf32> to vector<8xf32>
    %95 = vector.shape_cast %94 : vector<8xf32> to vector<8x1xf32>
    %96 = tpu.reciprocal %95 {approx = true} : vector<8x1xf32> -> vector<8x1xf32>
    %97 = vector.broadcast %96 : vector<8x1xf32> to vector<8x8xf32>
    %98 = arith.mulf %93, %97 : vector<8x8xf32>
    %cst_27 = arith.constant 0.000000e+00 : f32
    %99 = vector.broadcast %cst_27 : f32 to vector<8x32xf32>
    %100 = arith.select %46, %81, %99 : vector<8x32xi1>, vector<8x32xf32>
    %cst_28 = arith.constant dense<0.000000e+00> : vector<8x32xf32>
    %101 = tpu.matmul %98, %100, %cst_28 {dimension_numbers = #tpu.dot_dimension_numbers<[1], [0], [0], [1], [0, 0, 1, 1], [], []>} : vector<8x8xf32>, vector<8x32xf32>, vector<8x32xf32> -> vector<8x32xf32>
    %102 = arith.addf %82, %101 : vector<8x32xf32>
    %cst_29 = arith.constant 0.000000e+00 : f32
    %103 = vector.broadcast %cst_29 : f32 to vector<8x32xf32>
    %104 = arith.select %51, %79, %103 : vector<8x32xi1>, vector<8x32xf32>
    %cst_30 = arith.constant dense<0.000000e+00> : vector<8x8xf32>
    %105 = tpu.matmul %104, %80, %cst_30 {dimension_numbers = #tpu.dot_dimension_numbers<[1], [1], [0], [0], [0, 0, 1, 0], [], []>} : vector<8x32xf32>, vector<8x32xf32>, vector<8x8xf32> -> vector<8x8xf32>
    %cst_31 = arith.constant 0.353553385 : f32
    %106 = vector.broadcast %cst_31 : f32 to vector<8x8xf32>
    %107 = arith.mulf %105, %106 : vector<8x8xf32>
    %108 = arith.addf %107, %40 : vector<8x8xf32>
    %cst_32 = arith.constant dense<0xFF800000> : vector<8xf32>
    %109 = vector.multi_reduction <maximumf>, %108, %cst_32 [1] : vector<8x8xf32> to vector<8xf32>
    %110 = vector.shape_cast %109 : vector<8xf32> to vector<8x1xf32>
    %111 = vector.broadcast %110 : vector<8x1xf32> to vector<8x8xf32>
    %112 = arith.subf %108, %111 : vector<8x8xf32>
    %113 = math.exp %112 : vector<8x8xf32>
    %cst_33 = arith.constant dense<0.000000e+00> : vector<8xf32>
    %114 = vector.multi_reduction <add>, %113, %cst_33 [1] : vector<8x8xf32> to vector<8xf32>
    %115 = vector.shape_cast %114 : vector<8xf32> to vector<8x1xf32>
    %116 = tpu.reciprocal %115 {approx = true} : vector<8x1xf32> -> vector<8x1xf32>
    %117 = vector.broadcast %116 : vector<8x1xf32> to vector<8x8xf32>
    %118 = arith.mulf %113, %117 : vector<8x8xf32>
    %cst_34 = arith.constant 0.000000e+00 : f32
    %119 = vector.broadcast %cst_34 : f32 to vector<8x32xf32>
    %120 = arith.select %51, %81, %119 : vector<8x32xi1>, vector<8x32xf32>
    %cst_35 = arith.constant dense<0.000000e+00> : vector<8x32xf32>
    %121 = tpu.matmul %118, %120, %cst_35 {dimension_numbers = #tpu.dot_dimension_numbers<[1], [0], [0], [1], [0, 0, 1, 1], [], []>} : vector<8x8xf32>, vector<8x32xf32>, vector<8x32xf32> -> vector<8x32xf32>
    %122 = arith.addf %102, %121 : vector<8x32xf32>
    %cst_36 = arith.constant 0.000000e+00 : f32
    %123 = vector.broadcast %cst_36 : f32 to vector<8x32xf32>
    %124 = arith.select %56, %79, %123 : vector<8x32xi1>, vector<8x32xf32>
    %cst_37 = arith.constant dense<0.000000e+00> : vector<8x8xf32>
    %125 = tpu.matmul %124, %80, %cst_37 {dimension_numbers = #tpu.dot_dimension_numbers<[1], [1], [0], [0], [0, 0, 1, 0], [], []>} : vector<8x32xf32>, vector<8x32xf32>, vector<8x8xf32> -> vector<8x8xf32>
    %cst_38 = arith.constant 0.353553385 : f32
    %126 = vector.broadcast %cst_38 : f32 to vector<8x8xf32>
    %127 = arith.mulf %125, %126 : vector<8x8xf32>
    %128 = arith.addf %127, %40 : vector<8x8xf32>
    %cst_39 = arith.constant dense<0xFF800000> : vector<8xf32>
    %129 = vector.multi_reduction <maximumf>, %128, %cst_39 [1] : vector<8x8xf32> to vector<8xf32>
    %130 = vector.shape_cast %129 : vector<8xf32> to vector<8x1xf32>
    %131 = vector.broadcast %130 : vector<8x1xf32> to vector<8x8xf32>
    %132 = arith.subf %128, %131 : vector<8x8xf32>
    %133 = math.exp %132 : vector<8x8xf32>
    %cst_40 = arith.constant dense<0.000000e+00> : vector<8xf32>
    %134 = vector.multi_reduction <add>, %133, %cst_40 [1] : vector<8x8xf32> to vector<8xf32>
    %135 = vector.shape_cast %134 : vector<8xf32> to vector<8x1xf32>
    %136 = tpu.reciprocal %135 {approx = true} : vector<8x1xf32> -> vector<8x1xf32>
    %137 = vector.broadcast %136 : vector<8x1xf32> to vector<8x8xf32>
    %138 = arith.mulf %133, %137 : vector<8x8xf32>
    %cst_41 = arith.constant 0.000000e+00 : f32
    %139 = vector.broadcast %cst_41 : f32 to vector<8x32xf32>
    %140 = arith.select %56, %81, %139 : vector<8x32xi1>, vector<8x32xf32>
    %cst_42 = arith.constant dense<0.000000e+00> : vector<8x32xf32>
    %141 = tpu.matmul %138, %140, %cst_42 {dimension_numbers = #tpu.dot_dimension_numbers<[1], [0], [0], [1], [0, 0, 1, 1], [], []>} : vector<8x8xf32>, vector<8x32xf32>, vector<8x32xf32> -> vector<8x32xf32>
    %142 = arith.addf %122, %141 : vector<8x32xf32>
    %cst_43 = arith.constant 0.000000e+00 : f32
    %143 = vector.broadcast %cst_43 : f32 to vector<8x32xf32>
    %144 = arith.select %61, %79, %143 : vector<8x32xi1>, vector<8x32xf32>
    %cst_44 = arith.constant dense<0.000000e+00> : vector<8x8xf32>
    %145 = tpu.matmul %144, %80, %cst_44 {dimension_numbers = #tpu.dot_dimension_numbers<[1], [1], [0], [0], [0, 0, 1, 0], [], []>} : vector<8x32xf32>, vector<8x32xf32>, vector<8x8xf32> -> vector<8x8xf32>
    %cst_45 = arith.constant 0.353553385 : f32
    %146 = vector.broadcast %cst_45 : f32 to vector<8x8xf32>
    %147 = arith.mulf %145, %146 : vector<8x8xf32>
    %148 = arith.addf %147, %40 : vector<8x8xf32>
    %cst_46 = arith.constant dense<0xFF800000> : vector<8xf32>
    %149 = vector.multi_reduction <maximumf>, %148, %cst_46 [1] : vector<8x8xf32> to vector<8xf32>
    %150 = vector.shape_cast %149 : vector<8xf32> to vector<8x1xf32>
    %151 = vector.broadcast %150 : vector<8x1xf32> to vector<8x8xf32>
    %152 = arith.subf %148, %151 : vector<8x8xf32>
    %153 = math.exp %152 : vector<8x8xf32>
    %cst_47 = arith.constant dense<0.000000e+00> : vector<8xf32>
    %154 = vector.multi_reduction <add>, %153, %cst_47 [1] : vector<8x8xf32> to vector<8xf32>
    %155 = vector.shape_cast %154 : vector<8xf32> to vector<8x1xf32>
    %156 = tpu.reciprocal %155 {approx = true} : vector<8x1xf32> -> vector<8x1xf32>
    %157 = vector.broadcast %156 : vector<8x1xf32> to vector<8x8xf32>
    %158 = arith.mulf %153, %157 : vector<8x8xf32>
    %cst_48 = arith.constant 0.000000e+00 : f32
    %159 = vector.broadcast %cst_48 : f32 to vector<8x32xf32>
    %160 = arith.select %61, %81, %159 : vector<8x32xi1>, vector<8x32xf32>
    %cst_49 = arith.constant dense<0.000000e+00> : vector<8x32xf32>
    %161 = tpu.matmul %158, %160, %cst_49 {dimension_numbers = #tpu.dot_dimension_numbers<[1], [0], [0], [1], [0, 0, 1, 1], [], []>} : vector<8x8xf32>, vector<8x32xf32>, vector<8x32xf32> -> vector<8x32xf32>
    %162 = arith.addf %142, %161 : vector<8x32xf32>
    %cst_50 = arith.constant dense<0.000000e+00> : vector<8x32xf32>
    %163 = tpu.matmul %162, %65, %cst_50 {dimension_numbers = #tpu.dot_dimension_numbers<[1], [0], [0], [1], [0, 0, 1, 1], [], []>} : vector<8x32xf32>, vector<32x32xf32>, vector<8x32xf32> -> vector<8x32xf32>
    %164 = vector.broadcast %69 : vector<1x32xf32> to vector<8x32xf32>
    %165 = arith.addf %163, %164 : vector<8x32xf32>
    %166 = arith.addf %33, %165 : vector<8x32xf32>
    %cst_51 = arith.constant dense<0.000000e+00> : vector<8xf32>
    %167 = vector.multi_reduction <add>, %166, %cst_51 [1] : vector<8x32xf32> to vector<8xf32>
    %168 = vector.shape_cast %167 : vector<8xf32> to vector<8x1xf32>
    %cst_52 = arith.constant 3.200000e+01 : f32
    %169 = vector.broadcast %cst_52 : f32 to vector<8x1xf32>
    %170 = arith.divf %168, %169 : vector<8x1xf32>
    %171 = vector.broadcast %170 : vector<8x1xf32> to vector<8x32xf32>
    %172 = arith.subf %166, %171 : vector<8x32xf32>
    %173 = arith.mulf %172, %172 : vector<8x32xf32>
    %cst_53 = arith.constant dense<0.000000e+00> : vector<8xf32>
    %174 = vector.multi_reduction <add>, %173, %cst_53 [1] : vector<8x32xf32> to vector<8xf32>
    %175 = vector.shape_cast %174 : vector<8xf32> to vector<8x1xf32>
    %cst_54 = arith.constant 3.200000e+01 : f32
    %176 = vector.broadcast %cst_54 : f32 to vector<8x1xf32>
    %177 = arith.divf %175, %176 : vector<8x1xf32>
    %178 = vector.broadcast %170 : vector<8x1xf32> to vector<8x32xf32>
    %179 = arith.subf %166, %178 : vector<8x32xf32>
    %cst_55 = arith.constant 9.99999996E-13 : f32
    %180 = vector.broadcast %cst_55 : f32 to vector<8x1xf32>
    %181 = arith.addf %177, %180 : vector<8x1xf32>
    %182 = math.rsqrt %181 : vector<8x1xf32>
    %183 = vector.broadcast %182 : vector<8x1xf32> to vector<8x32xf32>
    %184 = arith.mulf %179, %183 : vector<8x32xf32>
    %185 = vector.broadcast %70 : vector<1x32xf32> to vector<8x32xf32>
    %186 = arith.mulf %184, %185 : vector<8x32xf32>
    %187 = vector.broadcast %71 : vector<1x32xf32> to vector<8x32xf32>
    %188 = arith.addf %186, %187 : vector<8x32xf32>
    %cst_56 = arith.constant dense<0.000000e+00> : vector<8x64xf32>
    %189 = tpu.matmul %188, %66, %cst_56 {dimension_numbers = #tpu.dot_dimension_numbers<[1], [0], [0], [1], [0, 0, 1, 1], [], []>} : vector<8x32xf32>, vector<32x64xf32>, vector<8x64xf32> -> vector<8x64xf32>
    %190 = vector.broadcast %72 : vector<1x64xf32> to vector<8x64xf32>
    %191 = arith.addf %189, %190 : vector<8x64xf32>
    %192 = arith.mulf %191, %191 : vector<8x64xf32>
    %193 = arith.mulf %191, %192 : vector<8x64xf32>
    %cst_57 = arith.constant 4.471500e-02 : f32
    %194 = vector.broadcast %cst_57 : f32 to vector<8x64xf32>
    %195 = arith.mulf %194, %193 : vector<8x64xf32>
    %196 = arith.addf %191, %195 : vector<8x64xf32>
    %cst_58 = arith.constant 0.797884583 : f32
    %197 = vector.broadcast %cst_58 : f32 to vector<8x64xf32>
    %198 = arith.mulf %197, %196 : vector<8x64xf32>
    %199 = math.tanh %198 : vector<8x64xf32>
    %cst_59 = arith.constant 1.000000e+00 : f32
    %200 = vector.broadcast %cst_59 : f32 to vector<8x64xf32>
    %201 = arith.addf %200, %199 : vector<8x64xf32>
    %cst_60 = arith.constant 5.000000e-01 : f32
    %202 = vector.broadcast %cst_60 : f32 to vector<8x64xf32>
    %203 = arith.mulf %202, %201 : vector<8x64xf32>
    %204 = arith.mulf %191, %203 : vector<8x64xf32>
    %cst_61 = arith.constant dense<0.000000e+00> : vector<8x32xf32>
    %205 = tpu.matmul %204, %67, %cst_61 {dimension_numbers = #tpu.dot_dimension_numbers<[1], [1], [0], [0], [0, 0, 1, 0], [], []>} : vector<8x64xf32>, vector<32x64xf32>, vector<8x32xf32> -> vector<8x32xf32>
    %206 = vector.broadcast %73 : vector<1x32xf32> to vector<8x32xf32>
    %207 = arith.addf %205, %206 : vector<8x32xf32>
    %208 = arith.addf %188, %207 : vector<8x32xf32>
    %cst_62 = arith.constant dense<0.000000e+00> : vector<8xf32>
    %209 = vector.multi_reduction <add>, %208, %cst_62 [1] : vector<8x32xf32> to vector<8xf32>
    %210 = vector.shape_cast %209 : vector<8xf32> to vector<8x1xf32>
    %cst_63 = arith.constant 3.200000e+01 : f32
    %211 = vector.broadcast %cst_63 : f32 to vector<8x1xf32>
    %212 = arith.divf %210, %211 : vector<8x1xf32>
    %213 = vector.broadcast %212 : vector<8x1xf32> to vector<8x32xf32>
    %214 = arith.subf %208, %213 : vector<8x32xf32>
    %215 = arith.mulf %214, %214 : vector<8x32xf32>
    %cst_64 = arith.constant dense<0.000000e+00> : vector<8xf32>
    %216 = vector.multi_reduction <add>, %215, %cst_64 [1] : vector<8x32xf32> to vector<8xf32>
    %217 = vector.shape_cast %216 : vector<8xf32> to vector<8x1xf32>
    %cst_65 = arith.constant 3.200000e+01 : f32
    %218 = vector.broadcast %cst_65 : f32 to vector<8x1xf32>
    %219 = arith.divf %217, %218 : vector<8x1xf32>
    %220 = vector.broadcast %212 : vector<8x1xf32> to vector<8x32xf32>
    %221 = arith.subf %208, %220 : vector<8x32xf32>
    %cst_66 = arith.constant 9.99999996E-13 : f32
    %222 = vector.broadcast %cst_66 : f32 to vector<8x1xf32>
    %223 = arith.addf %219, %222 : vector<8x1xf32>
    %224 = math.rsqrt %223 : vector<8x1xf32>
    %225 = vector.broadcast %224 : vector<8x1xf32> to vector<8x32xf32>
    %226 = arith.mulf %221, %225 : vector<8x32xf32>
    %227 = vector.broadcast %74 : vector<1x32xf32> to vector<8x32xf32>
    %228 = arith.mulf %226, %227 : vector<8x32xf32>
    %229 = vector.broadcast %75 : vector<1x32xf32> to vector<8x32xf32>
    %230 = arith.addf %228, %229 : vector<8x32xf32>
    %c1 = arith.constant 1 : index
    %c0_67 = arith.constant 0 : index
    %c0_68 = arith.constant 0 : index
    %231 = vector.load %arg3[%c1, %c0_67, %c0_68] : memref<2x40x256xf32, #tpu.memory_space<vmem>>, vector<1x40x256xf32>
    %232 = vector.shape_cast %231 : vector<1x40x256xf32> to vector<40x256xf32>
    %233 = vector.extract_strided_slice %232 {offsets = [0, 0], sizes = [32, 96], strides = [1, 1]} : vector<40x256xf32> to vector<32x96xf32>
    %234 = vector.extract_strided_slice %232 {offsets = [0, 96], sizes = [32, 32], strides = [1, 1]} : vector<40x256xf32> to vector<32x32xf32>
    %235 = vector.extract_strided_slice %232 {offsets = [0, 128], sizes = [32, 64], strides = [1, 1]} : vector<40x256xf32> to vector<32x64xf32>
    %236 = vector.extract_strided_slice %232 {offsets = [0, 192], sizes = [32, 64], strides = [1, 1]} : vector<40x256xf32> to vector<32x64xf32>
    %237 = vector.extract_strided_slice %232 {offsets = [32, 0], sizes = [1, 96], strides = [1, 1]} : vector<40x256xf32> to vector<1x96xf32>
    %238 = vector.extract_strided_slice %232 {offsets = [33, 0], sizes = [1, 32], strides = [1, 1]} : vector<40x256xf32> to vector<1x32xf32>
    %239 = vector.extract_strided_slice %232 {offsets = [34, 0], sizes = [1, 32], strides = [1, 1]} : vector<40x256xf32> to vector<1x32xf32>
    %240 = vector.extract_strided_slice %232 {offsets = [35, 0], sizes = [1, 32], strides = [1, 1]} : vector<40x256xf32> to vector<1x32xf32>
    %241 = vector.extract_strided_slice %232 {offsets = [36, 0], sizes = [1, 64], strides = [1, 1]} : vector<40x256xf32> to vector<1x64xf32>
    %242 = vector.extract_strided_slice %232 {offsets = [37, 0], sizes = [1, 32], strides = [1, 1]} : vector<40x256xf32> to vector<1x32xf32>
    %243 = vector.extract_strided_slice %232 {offsets = [38, 0], sizes = [1, 32], strides = [1, 1]} : vector<40x256xf32> to vector<1x32xf32>
    %244 = vector.extract_strided_slice %232 {offsets = [39, 0], sizes = [1, 32], strides = [1, 1]} : vector<40x256xf32> to vector<1x32xf32>
    %cst_69 = arith.constant dense<0.000000e+00> : vector<8x96xf32>
    %245 = tpu.matmul %230, %233, %cst_69 {dimension_numbers = #tpu.dot_dimension_numbers<[1], [0], [0], [1], [0, 0, 1, 1], [], []>} : vector<8x32xf32>, vector<32x96xf32>, vector<8x96xf32> -> vector<8x96xf32>
    %246 = vector.broadcast %237 : vector<1x96xf32> to vector<8x96xf32>
    %247 = arith.addf %245, %246 : vector<8x96xf32>
    %248 = vector.extract_strided_slice %247 {offsets = [0, 0], sizes = [8, 32], strides = [1, 1]} : vector<8x96xf32> to vector<8x32xf32>
    %249 = vector.extract_strided_slice %247 {offsets = [0, 32], sizes = [8, 32], strides = [1, 1]} : vector<8x96xf32> to vector<8x32xf32>
    %250 = vector.extract_strided_slice %247 {offsets = [0, 64], sizes = [8, 32], strides = [1, 1]} : vector<8x96xf32> to vector<8x32xf32>
    %cst_70 = arith.constant 0.000000e+00 : f32
    %251 = vector.broadcast %cst_70 : f32 to vector<8x32xf32>
    %cst_71 = arith.constant 0.000000e+00 : f32
    %252 = vector.broadcast %cst_71 : f32 to vector<8x32xf32>
    %253 = arith.select %46, %248, %252 : vector<8x32xi1>, vector<8x32xf32>
    %cst_72 = arith.constant dense<0.000000e+00> : vector<8x8xf32>
    %254 = tpu.matmul %253, %249, %cst_72 {dimension_numbers = #tpu.dot_dimension_numbers<[1], [1], [0], [0], [0, 0, 1, 0], [], []>} : vector<8x32xf32>, vector<8x32xf32>, vector<8x8xf32> -> vector<8x8xf32>
    %cst_73 = arith.constant 0.353553385 : f32
    %255 = vector.broadcast %cst_73 : f32 to vector<8x8xf32>
    %256 = arith.mulf %254, %255 : vector<8x8xf32>
    %257 = arith.addf %256, %40 : vector<8x8xf32>
    %cst_74 = arith.constant dense<0xFF800000> : vector<8xf32>
    %258 = vector.multi_reduction <maximumf>, %257, %cst_74 [1] : vector<8x8xf32> to vector<8xf32>
    %259 = vector.shape_cast %258 : vector<8xf32> to vector<8x1xf32>
    %260 = vector.broadcast %259 : vector<8x1xf32> to vector<8x8xf32>
    %261 = arith.subf %257, %260 : vector<8x8xf32>
    %262 = math.exp %261 : vector<8x8xf32>
    %cst_75 = arith.constant dense<0.000000e+00> : vector<8xf32>
    %263 = vector.multi_reduction <add>, %262, %cst_75 [1] : vector<8x8xf32> to vector<8xf32>
    %264 = vector.shape_cast %263 : vector<8xf32> to vector<8x1xf32>
    %265 = tpu.reciprocal %264 {approx = true} : vector<8x1xf32> -> vector<8x1xf32>
    %266 = vector.broadcast %265 : vector<8x1xf32> to vector<8x8xf32>
    %267 = arith.mulf %262, %266 : vector<8x8xf32>
    %cst_76 = arith.constant 0.000000e+00 : f32
    %268 = vector.broadcast %cst_76 : f32 to vector<8x32xf32>
    %269 = arith.select %46, %250, %268 : vector<8x32xi1>, vector<8x32xf32>
    %cst_77 = arith.constant dense<0.000000e+00> : vector<8x32xf32>
    %270 = tpu.matmul %267, %269, %cst_77 {dimension_numbers = #tpu.dot_dimension_numbers<[1], [0], [0], [1], [0, 0, 1, 1], [], []>} : vector<8x8xf32>, vector<8x32xf32>, vector<8x32xf32> -> vector<8x32xf32>
    %271 = arith.addf %251, %270 : vector<8x32xf32>
    %cst_78 = arith.constant 0.000000e+00 : f32
    %272 = vector.broadcast %cst_78 : f32 to vector<8x32xf32>
    %273 = arith.select %51, %248, %272 : vector<8x32xi1>, vector<8x32xf32>
    %cst_79 = arith.constant dense<0.000000e+00> : vector<8x8xf32>
    %274 = tpu.matmul %273, %249, %cst_79 {dimension_numbers = #tpu.dot_dimension_numbers<[1], [1], [0], [0], [0, 0, 1, 0], [], []>} : vector<8x32xf32>, vector<8x32xf32>, vector<8x8xf32> -> vector<8x8xf32>
    %cst_80 = arith.constant 0.353553385 : f32
    %275 = vector.broadcast %cst_80 : f32 to vector<8x8xf32>
    %276 = arith.mulf %274, %275 : vector<8x8xf32>
    %277 = arith.addf %276, %40 : vector<8x8xf32>
    %cst_81 = arith.constant dense<0xFF800000> : vector<8xf32>
    %278 = vector.multi_reduction <maximumf>, %277, %cst_81 [1] : vector<8x8xf32> to vector<8xf32>
    %279 = vector.shape_cast %278 : vector<8xf32> to vector<8x1xf32>
    %280 = vector.broadcast %279 : vector<8x1xf32> to vector<8x8xf32>
    %281 = arith.subf %277, %280 : vector<8x8xf32>
    %282 = math.exp %281 : vector<8x8xf32>
    %cst_82 = arith.constant dense<0.000000e+00> : vector<8xf32>
    %283 = vector.multi_reduction <add>, %282, %cst_82 [1] : vector<8x8xf32> to vector<8xf32>
    %284 = vector.shape_cast %283 : vector<8xf32> to vector<8x1xf32>
    %285 = tpu.reciprocal %284 {approx = true} : vector<8x1xf32> -> vector<8x1xf32>
    %286 = vector.broadcast %285 : vector<8x1xf32> to vector<8x8xf32>
    %287 = arith.mulf %282, %286 : vector<8x8xf32>
    %cst_83 = arith.constant 0.000000e+00 : f32
    %288 = vector.broadcast %cst_83 : f32 to vector<8x32xf32>
    %289 = arith.select %51, %250, %288 : vector<8x32xi1>, vector<8x32xf32>
    %cst_84 = arith.constant dense<0.000000e+00> : vector<8x32xf32>
    %290 = tpu.matmul %287, %289, %cst_84 {dimension_numbers = #tpu.dot_dimension_numbers<[1], [0], [0], [1], [0, 0, 1, 1], [], []>} : vector<8x8xf32>, vector<8x32xf32>, vector<8x32xf32> -> vector<8x32xf32>
    %291 = arith.addf %271, %290 : vector<8x32xf32>
    %cst_85 = arith.constant 0.000000e+00 : f32
    %292 = vector.broadcast %cst_85 : f32 to vector<8x32xf32>
    %293 = arith.select %56, %248, %292 : vector<8x32xi1>, vector<8x32xf32>
    %cst_86 = arith.constant dense<0.000000e+00> : vector<8x8xf32>
    %294 = tpu.matmul %293, %249, %cst_86 {dimension_numbers = #tpu.dot_dimension_numbers<[1], [1], [0], [0], [0, 0, 1, 0], [], []>} : vector<8x32xf32>, vector<8x32xf32>, vector<8x8xf32> -> vector<8x8xf32>
    %cst_87 = arith.constant 0.353553385 : f32
    %295 = vector.broadcast %cst_87 : f32 to vector<8x8xf32>
    %296 = arith.mulf %294, %295 : vector<8x8xf32>
    %297 = arith.addf %296, %40 : vector<8x8xf32>
    %cst_88 = arith.constant dense<0xFF800000> : vector<8xf32>
    %298 = vector.multi_reduction <maximumf>, %297, %cst_88 [1] : vector<8x8xf32> to vector<8xf32>
    %299 = vector.shape_cast %298 : vector<8xf32> to vector<8x1xf32>
    %300 = vector.broadcast %299 : vector<8x1xf32> to vector<8x8xf32>
    %301 = arith.subf %297, %300 : vector<8x8xf32>
    %302 = math.exp %301 : vector<8x8xf32>
    %cst_89 = arith.constant dense<0.000000e+00> : vector<8xf32>
    %303 = vector.multi_reduction <add>, %302, %cst_89 [1] : vector<8x8xf32> to vector<8xf32>
    %304 = vector.shape_cast %303 : vector<8xf32> to vector<8x1xf32>
    %305 = tpu.reciprocal %304 {approx = true} : vector<8x1xf32> -> vector<8x1xf32>
    %306 = vector.broadcast %305 : vector<8x1xf32> to vector<8x8xf32>
    %307 = arith.mulf %302, %306 : vector<8x8xf32>
    %cst_90 = arith.constant 0.000000e+00 : f32
    %308 = vector.broadcast %cst_90 : f32 to vector<8x32xf32>
    %309 = arith.select %56, %250, %308 : vector<8x32xi1>, vector<8x32xf32>
    %cst_91 = arith.constant dense<0.000000e+00> : vector<8x32xf32>
    %310 = tpu.matmul %307, %309, %cst_91 {dimension_numbers = #tpu.dot_dimension_numbers<[1], [0], [0], [1], [0, 0, 1, 1], [], []>} : vector<8x8xf32>, vector<8x32xf32>, vector<8x32xf32> -> vector<8x32xf32>
    %311 = arith.addf %291, %310 : vector<8x32xf32>
    %cst_92 = arith.constant 0.000000e+00 : f32
    %312 = vector.broadcast %cst_92 : f32 to vector<8x32xf32>
    %313 = arith.select %61, %248, %312 : vector<8x32xi1>, vector<8x32xf32>
    %cst_93 = arith.constant dense<0.000000e+00> : vector<8x8xf32>
    %314 = tpu.matmul %313, %249, %cst_93 {dimension_numbers = #tpu.dot_dimension_numbers<[1], [1], [0], [0], [0, 0, 1, 0], [], []>} : vector<8x32xf32>, vector<8x32xf32>, vector<8x8xf32> -> vector<8x8xf32>
    %cst_94 = arith.constant 0.353553385 : f32
    %315 = vector.broadcast %cst_94 : f32 to vector<8x8xf32>
    %316 = arith.mulf %314, %315 : vector<8x8xf32>
    %317 = arith.addf %316, %40 : vector<8x8xf32>
    %cst_95 = arith.constant dense<0xFF800000> : vector<8xf32>
    %318 = vector.multi_reduction <maximumf>, %317, %cst_95 [1] : vector<8x8xf32> to vector<8xf32>
    %319 = vector.shape_cast %318 : vector<8xf32> to vector<8x1xf32>
    %320 = vector.broadcast %319 : vector<8x1xf32> to vector<8x8xf32>
    %321 = arith.subf %317, %320 : vector<8x8xf32>
    %322 = math.exp %321 : vector<8x8xf32>
    %cst_96 = arith.constant dense<0.000000e+00> : vector<8xf32>
    %323 = vector.multi_reduction <add>, %322, %cst_96 [1] : vector<8x8xf32> to vector<8xf32>
    %324 = vector.shape_cast %323 : vector<8xf32> to vector<8x1xf32>
    %325 = tpu.reciprocal %324 {approx = true} : vector<8x1xf32> -> vector<8x1xf32>
    %326 = vector.broadcast %325 : vector<8x1xf32> to vector<8x8xf32>
    %327 = arith.mulf %322, %326 : vector<8x8xf32>
    %cst_97 = arith.constant 0.000000e+00 : f32
    %328 = vector.broadcast %cst_97 : f32 to vector<8x32xf32>
    %329 = arith.select %61, %250, %328 : vector<8x32xi1>, vector<8x32xf32>
    %cst_98 = arith.constant dense<0.000000e+00> : vector<8x32xf32>
    %330 = tpu.matmul %327, %329, %cst_98 {dimension_numbers = #tpu.dot_dimension_numbers<[1], [0], [0], [1], [0, 0, 1, 1], [], []>} : vector<8x8xf32>, vector<8x32xf32>, vector<8x32xf32> -> vector<8x32xf32>
    %331 = arith.addf %311, %330 : vector<8x32xf32>
    %cst_99 = arith.constant dense<0.000000e+00> : vector<8x32xf32>
    %332 = tpu.matmul %331, %234, %cst_99 {dimension_numbers = #tpu.dot_dimension_numbers<[1], [0], [0], [1], [0, 0, 1, 1], [], []>} : vector<8x32xf32>, vector<32x32xf32>, vector<8x32xf32> -> vector<8x32xf32>
    %333 = vector.broadcast %238 : vector<1x32xf32> to vector<8x32xf32>
    %334 = arith.addf %332, %333 : vector<8x32xf32>
    %335 = arith.addf %230, %334 : vector<8x32xf32>
    %cst_100 = arith.constant dense<0.000000e+00> : vector<8xf32>
    %336 = vector.multi_reduction <add>, %335, %cst_100 [1] : vector<8x32xf32> to vector<8xf32>
    %337 = vector.shape_cast %336 : vector<8xf32> to vector<8x1xf32>
    %cst_101 = arith.constant 3.200000e+01 : f32
    %338 = vector.broadcast %cst_101 : f32 to vector<8x1xf32>
    %339 = arith.divf %337, %338 : vector<8x1xf32>
    %340 = vector.broadcast %339 : vector<8x1xf32> to vector<8x32xf32>
    %341 = arith.subf %335, %340 : vector<8x32xf32>
    %342 = arith.mulf %341, %341 : vector<8x32xf32>
    %cst_102 = arith.constant dense<0.000000e+00> : vector<8xf32>
    %343 = vector.multi_reduction <add>, %342, %cst_102 [1] : vector<8x32xf32> to vector<8xf32>
    %344 = vector.shape_cast %343 : vector<8xf32> to vector<8x1xf32>
    %cst_103 = arith.constant 3.200000e+01 : f32
    %345 = vector.broadcast %cst_103 : f32 to vector<8x1xf32>
    %346 = arith.divf %344, %345 : vector<8x1xf32>
    %347 = vector.broadcast %339 : vector<8x1xf32> to vector<8x32xf32>
    %348 = arith.subf %335, %347 : vector<8x32xf32>
    %cst_104 = arith.constant 9.99999996E-13 : f32
    %349 = vector.broadcast %cst_104 : f32 to vector<8x1xf32>
    %350 = arith.addf %346, %349 : vector<8x1xf32>
    %351 = math.rsqrt %350 : vector<8x1xf32>
    %352 = vector.broadcast %351 : vector<8x1xf32> to vector<8x32xf32>
    %353 = arith.mulf %348, %352 : vector<8x32xf32>
    %354 = vector.broadcast %239 : vector<1x32xf32> to vector<8x32xf32>
    %355 = arith.mulf %353, %354 : vector<8x32xf32>
    %356 = vector.broadcast %240 : vector<1x32xf32> to vector<8x32xf32>
    %357 = arith.addf %355, %356 : vector<8x32xf32>
    %cst_105 = arith.constant dense<0.000000e+00> : vector<8x64xf32>
    %358 = tpu.matmul %357, %235, %cst_105 {dimension_numbers = #tpu.dot_dimension_numbers<[1], [0], [0], [1], [0, 0, 1, 1], [], []>} : vector<8x32xf32>, vector<32x64xf32>, vector<8x64xf32> -> vector<8x64xf32>
    %359 = vector.broadcast %241 : vector<1x64xf32> to vector<8x64xf32>
    %360 = arith.addf %358, %359 : vector<8x64xf32>
    %361 = arith.mulf %360, %360 : vector<8x64xf32>
    %362 = arith.mulf %360, %361 : vector<8x64xf32>
    %cst_106 = arith.constant 4.471500e-02 : f32
    %363 = vector.broadcast %cst_106 : f32 to vector<8x64xf32>
    %364 = arith.mulf %363, %362 : vector<8x64xf32>
    %365 = arith.addf %360, %364 : vector<8x64xf32>
    %cst_107 = arith.constant 0.797884583 : f32
    %366 = vector.broadcast %cst_107 : f32 to vector<8x64xf32>
    %367 = arith.mulf %366, %365 : vector<8x64xf32>
    %368 = math.tanh %367 : vector<8x64xf32>
    %cst_108 = arith.constant 1.000000e+00 : f32
    %369 = vector.broadcast %cst_108 : f32 to vector<8x64xf32>
    %370 = arith.addf %369, %368 : vector<8x64xf32>
    %cst_109 = arith.constant 5.000000e-01 : f32
    %371 = vector.broadcast %cst_109 : f32 to vector<8x64xf32>
    %372 = arith.mulf %371, %370 : vector<8x64xf32>
    %373 = arith.mulf %360, %372 : vector<8x64xf32>
    %cst_110 = arith.constant dense<0.000000e+00> : vector<8x32xf32>
    %374 = tpu.matmul %373, %236, %cst_110 {dimension_numbers = #tpu.dot_dimension_numbers<[1], [1], [0], [0], [0, 0, 1, 0], [], []>} : vector<8x64xf32>, vector<32x64xf32>, vector<8x32xf32> -> vector<8x32xf32>
    %375 = vector.broadcast %242 : vector<1x32xf32> to vector<8x32xf32>
    %376 = arith.addf %374, %375 : vector<8x32xf32>
    %377 = arith.addf %357, %376 : vector<8x32xf32>
    %cst_111 = arith.constant dense<0.000000e+00> : vector<8xf32>
    %378 = vector.multi_reduction <add>, %377, %cst_111 [1] : vector<8x32xf32> to vector<8xf32>
    %379 = vector.shape_cast %378 : vector<8xf32> to vector<8x1xf32>
    %cst_112 = arith.constant 3.200000e+01 : f32
    %380 = vector.broadcast %cst_112 : f32 to vector<8x1xf32>
    %381 = arith.divf %379, %380 : vector<8x1xf32>
    %382 = vector.broadcast %381 : vector<8x1xf32> to vector<8x32xf32>
    %383 = arith.subf %377, %382 : vector<8x32xf32>
    %384 = arith.mulf %383, %383 : vector<8x32xf32>
    %cst_113 = arith.constant dense<0.000000e+00> : vector<8xf32>
    %385 = vector.multi_reduction <add>, %384, %cst_113 [1] : vector<8x32xf32> to vector<8xf32>
    %386 = vector.shape_cast %385 : vector<8xf32> to vector<8x1xf32>
    %cst_114 = arith.constant 3.200000e+01 : f32
    %387 = vector.broadcast %cst_114 : f32 to vector<8x1xf32>
    %388 = arith.divf %386, %387 : vector<8x1xf32>
    %389 = vector.broadcast %381 : vector<8x1xf32> to vector<8x32xf32>
    %390 = arith.subf %377, %389 : vector<8x32xf32>
    %cst_115 = arith.constant 9.99999996E-13 : f32
    %391 = vector.broadcast %cst_115 : f32 to vector<8x1xf32>
    %392 = arith.addf %388, %391 : vector<8x1xf32>
    %393 = math.rsqrt %392 : vector<8x1xf32>
    %394 = vector.broadcast %393 : vector<8x1xf32> to vector<8x32xf32>
    %395 = arith.mulf %390, %394 : vector<8x32xf32>
    %396 = vector.broadcast %243 : vector<1x32xf32> to vector<8x32xf32>
    %397 = arith.mulf %395, %396 : vector<8x32xf32>
    %398 = vector.broadcast %244 : vector<1x32xf32> to vector<8x32xf32>
    %399 = arith.addf %397, %398 : vector<8x32xf32>
    %400 = vector.extract_strided_slice %399 {offsets = [0, 0], sizes = [1, 32], strides = [1, 1]} : vector<8x32xf32> to vector<1x32xf32>
    %c0_116 = arith.constant 0 : index
    %c0_117 = arith.constant 0 : index
    %401 = vector.load %arg4[%c0_116, %c0_117] : memref<1x32xf32, #tpu.memory_space<vmem>>, vector<1x32xf32>
    tpu.vector_store %arg4[%c0_116, %c0_117], %400 {strides = array<i32>} : memref<1x32xf32, #tpu.memory_space<vmem>>, vector<1x32xf32>,
    return
  }
  func.func @transform_0(%arg0: i32) -> (i32, i32) {
    %c0_i32 = arith.constant 0 : i32
    %c0_i32_0 = arith.constant 0 : i32
    %c0_i32_1 = arith.constant 0 : i32
    return %c0_i32, %c0_i32_0 : i32, i32
  }
  func.func @transform_1(%arg0: i32) -> (i32, i32) {
    %c0_i32 = arith.constant 0 : i32
    %c0_i32_0 = arith.constant 0 : i32
    %c0_i32_1 = arith.constant 0 : i32
    return %c0_i32, %c0_i32_0 : i32, i32
  }
  func.func @transform_2(%arg0: i32) -> (i32, i32, i32) {
    %c0_i32 = arith.constant 0 : i32
    %c0_i32_0 = arith.constant 0 : i32
    %c0_i32_1 = arith.constant 0 : i32
    %c0_i32_2 = arith.constant 0 : i32
    return %c0_i32, %c0_i32_0, %c0_i32_1 : i32, i32, i32
  }
  func.func @transform_3(%arg0: i32) -> (i32, i32) {
    %c0_i32 = arith.constant 0 : i32
    %c0_i32_0 = arith.constant 0 : i32
    %c0_i32_1 = arith.constant 0 : i32
    return %c0_i32, %c0_i32_0 : i32, i32
  }
}

</mosaic_0001>

<bundles_post_ra>
// kernel: tpu_custom_call.1
= control target key start
LH: loop header
LB: loop body
LE: loop exit
PB: predicated region body
PF: predicated region fallthrough
CT: control target
= control target key end

     0   :  { %8 = vsyncpa [#allocation3], 0  ;;  %s3388_s0 = inlined_call_operand.vmem [shape: s32[8,1], index: 0, kind: input, shape index: {}]   ;;  %s3389_s1 = inlined_call_operand.vmem [shape: f32[74,32], index: 1, kind: input, shape index: {}]   ;;  %s3390_s2 = inlined_call_operand.hbm [shape: f32[2,40,256], index: 2, kind: input, shape index: {}]   ;;  %s3391_s3 = inlined_call_operand.hbm [shape: f32[1,32], index: 3, kind: output, shape index: {}]  }
   0x1   :  { %9 = vsyncpa [#allocation4], 0  ;;  %s2936_s12 = smov [#allocation2]   ;;  %s2888_s16 = scalar_lea.hbm %s3390_s2, 2560 }
   0x2   :  { %s19_s13 = sshll.u32 %s2936_s12, 4  ;;  %p2889_p0 = scmp.ne.s32.totalorder %s3390_s2, %s2888_s16  ;;  %s20_s13 = int_to_ptr.vmem [resolvable:$true] %s19_s13 }
   0x3   :  { %p2892_p1 = scmp.lt.u32.totalorder %s2888_s16, %s3390_s2 }
   0x5   :  { %p2894_p2 = pnand %p2892_p1, %p2889_p0 }
   0x7   :  { %2897 = shalt.err (!%p2894_p2)
}
   0x8   :  { %s2898_s21 = scalar_lea.vmem %s20_s13, 2560  ;;  %p2903_p4 = scmp.lt.s32.totalorder %s20_s13, %s20_s13 }
   0x9   :  { %p2899_p3 = scmp.ne.s32.totalorder %s20_s13, %s2898_s21  ;;  %p2904_p5 = scmp.lt.s32.totalorder %s2898_s21, %s2898_s21 }
   0xb   :  { %p2905_p6 = por %p2904_p5, %p2903_p4 }
   0xd   :  { %p2906_p7 = pnand %p2905_p6, %p2899_p3 }
   0xf   :  { %2909 = shalt.err (!%p2906_p7)
}
  0x10   :  { %s2937_s22 = smov 256   ;;  %s2938_s23 = smov 16  }
  0x11   :  { %25 = dma.hbm_to_vmem [thread:$0]  %s3390_s2, 2560, %s20_s13, [#allocation3], %s2937_s22, %s2937_s22, %s2938_s23  }
  0x12   :  { %2932 = dma.done.wait [#allocation3], 2560  }
  0x13   :  { %2933 = vsyncadd [#allocation3], 4294964736  ;;  %v2939_v0 = vmov 0   ;;  %v2940_v1 = vmov 0.0|0.0   ;;  %v2941_v2 = vmov 0.0   ;;  %v29_v3 = vld [vmem:[%s3388_s0] sm:$0xff]  ;;  %v30_v16 = vlaneseq }
  0x14   :  { %2801 = vset.pattern.permute.xlu0 %v2939_v0  ;;  %2714 = vmatprep.subr.bf16.mxu0 %v2940_v1  ;;  %v38_v4 = vld [vmem:[%s3389_s1] sm:$0xff]  ;;  %v39_v5 = vld [vmem:[%s3389_s1 + $0x8] sm:$0xff]  ;;  %v40_v7 = vld [vmem:[%s3389_s1 + $0x10] sm:$0xff]  ;;  %vm2942_vm0 = vmmov 0   ;;  %vm47_vm1 = vcmask 523264   ;;  %vm123_vm3 = vcmask 261120  }
  0x15   :  { %2541 = vmatprep.subr.mxu1 %v2941_v2  ;;  %33 = vperm.xlu0 %2801, %v29_v3   ;;  %v2715_v6 = vpack.c.bf16 %v39_v5, %v38_v4  ;;  %v41_v8 = vld [vmem:[%s3389_s1 + $0x18] sm:$0xff]  ;;  %v42_v10 = vld [vmem:[%s3389_s1 + $0x20] sm:$0xff]  ;;  %v43_v11 = vld [vmem:[%s3389_s1 + $0x28] sm:$0xff]  ;;  %v3016_v17 = vand.u32 127, %v30_v16  ;;  %v3061_v48 = vshrl.u32 %v30_v16, 7  ;;  %vm404_vm15 = vcmask 64512  }
  0x16   :  { %2538 = vmatprep.mubr.msk.f32.mxu0 %vm2942_vm0, %v2941_v2  ;;  %2543 = vmatprep.mubr.msk.f32.mxu1 %vm2942_vm0, %v2941_v2  ;;  %v2718_v9 = vpack.c.bf16 %v41_v8, %v40_v7  ;;  %v2721_v12 = vpack.c.bf16 %v43_v11, %v42_v10  ;;  %v44_v13 = vld [vmem:[%s3389_s1 + $0x30] sm:$0xff]  ;;  %v45_v14 = vld [vmem:[%s3389_s1 + $0x38] sm:$0xff]  ;;  %v46_v20 = vld [vmem:[%s3389_s1 + $0x40] sm:$0xff]  ;;  %s2944_s21 = smov 64   ;;  %s2945_s22 = smov 32  }
  0x17   :  { %2716 = vmatpush3.bf16.msra.mxu0 %v2715_v6  ;;  %v2724_v15 = vpack.c.bf16 %v45_v14, %v44_v13  ;;  %vm148_vm4 = vcmp.eq.s32.totalorder %v3016_v17, 0  ;;  %v3031_v30 = vld [vmem:[#allocation2] sm:$0xff]  ;;  %v3033_v31 = vld [vmem:[#allocation2 + $0x10] sm:$0xff]  ;;  %v2386_v41 = vld [vmem:[%s3389_s1 + $0x48] ss:$0 sm:$0xff]  ;;  %v248_v49 = vsub.s32 0, %v3061_v48 }
  0x18   :  { %2717 = vmatprep.subr.bf16.mxu0 %v2940_v1  ;;  %v2388_v32 = vsel %vm148_vm4, 1.0, %v2941_v2  ;;  %v2727_v33 = vpack.c.bf16 %v3033_v31, %v3031_v30  ;;  %v3042_v34 = vld [vmem:[#allocation2 + $0x20] sm:$0xff]  ;;  %v3044_v35 = vld [vmem:[#allocation2 + $0x30] sm:$0xff]  ;;  %v2387_v43 = vld [vmem:[%s3389_s1 + $0x49] ss:$0 sm:$0xff]  ;;  %s2943_s1 = smov 96  }
  0x19   :  { %v2730_v36 = vpack.c.bf16 %v3044_v35, %v3042_v34  ;;  %v3064_v50 = vld [vmem:[#allocation2 + $0x40] sm:$0xff]  ;;  %vm231_vm5 = vcmp.ge.s32.totalorder %v3016_v17, 16  ;;  %vm232_vm6 = vcmp.lt.s32.totalorder %v3016_v17, 24  ;;  %vm226_vm7 = vcmp.lt.s32.totalorder %v3016_v17, 8  ;;  %s2946_s23 = smov [#allocation5]  }
  0x1a   :  { %v249_v51 = vrot.slane %v3064_v50, %v248_v49  ;;  %vm3076_vm8 = vmand %vm231_vm5, %vm232_vm6  ;;  %vm228_vm9 = vcmp.ge.s32.totalorder %v3016_v17, 8  ;;  %vm229_vm10 = vcmp.lt.s32.totalorder %v3016_v17, 16  ;;  %vm234_vm11 = vcmp.ge.s32.totalorder %v3016_v17, 24  ;;  %s2375_s24 = sshll.u32 %s2946_s23, 4  ;;  %s2376_s24 = int_to_ptr.vmem [resolvable:$true] %s2375_s24 }
  0x1b   :  { %2719 = vmatpush3.bf16.msra.mxu0 %v2718_v9  ;;  %vm235_vm12 = vcmp.lt.s32.totalorder %v3016_v17, 32  ;;  %vm3094_vm13 = vmand %vm228_vm9, %vm229_vm10  ;;  %s2910_s25 = scalar_lea.vmem %s2376_s24, 16  ;;  %s2914_s26 = scalar_lea.vmem %s2376_s24, 32 }
  0x1c   :  { %2720 = vmatprep.subr.bf16.mxu0 %v2940_v1  ;;  %vm3100_vm14 = vmand %vm234_vm11, %vm235_vm12  ;;  %p2911_p8 = scmp.ne.s32.totalorder %s2376_s24, %s2910_s25  ;;  %p2915_p9 = scmp.lt.s32.totalorder %s2376_s24, %s2376_s24 }
  0x1d   :  { %p2916_p10 = scmp.lt.s32.totalorder %s2914_s26, %s2910_s25 }
  0x1f   :  { %2722 = vmatpush3.bf16.msra.mxu0 %v2721_v12  ;;  %p2917_p11 = por %p2916_p10, %p2915_p9 }
  0x20   :  { %2723 = vmatprep.subr.bf16.mxu0 %v2940_v1 }
  0x21   :  { %p2918_p12 = pnand %p2917_p11, %p2911_p8 }
  0x23   :  { %2725 = vmatpush3.bf16.msra.mxu0 %v2724_v15 }
  0x24   :  { %2577 = vmatprep.subr.mxu0 %v2941_v2 }
  0x94   :  { %v34_v18 = vpop.permute.xlu0 %33 }
  0x95   :  { %vm35_vm2 = vcmp.eq.s32.totalorder %v3016_v17, %v34_v18 }
  0x96   :  { %v2384_v19 = vsel %vm35_vm2, 1.0, %v2941_v2  ;;  %vm3199_vm2 = vmpackc.low %vm47_vm1, %vm47_vm1 }
  0x97   :  { %2539 = vmatmul.mubr.msk.f32.vlgmr.msra.gmra.mrb[0].mxu0 %vm47_vm1, %v2384_v19  ;;  %2542 = vmatpush3.xpose.msk.msra.mxu1 %vm47_vm1, %v2384_v19 }
  0x98   :  { %2726 = vmatprep.subr.bf16.mxu1 %v2940_v1  ;;  %2579 = vmatprep.mubr.msk.f32.mxu0 %vm2942_vm0, %v2941_v2 }
  0x9a   :  { %2544 = vmatmul.mubr.msk.f32.vlgmr.msra.gmra.mrb[0].mxu1 %vm47_vm1, %v2388_v32 }
  0x9b   :  { %2728 = vmatpush3.bf16.msra.mxu1 %v2727_v33  ;;  %2554 = vmatprep.mubr.msk.f32.mxu1 %vm2942_vm0, %v2941_v2 }
  0x9c   :  { %2729 = vmatprep.subr.bf16.mxu1 %v2940_v1 }
  0x9f   :  { %2731 = vmatpush3.bf16.msra.mxu1 %v2730_v36 }
  0xa0   :  { %2557 = vmatprep.subr.mxu1 %v2941_v2 }
 0x16a   :  { %v117_v21 = vpop.f32.mrb[0].mxu0 }
 0x16b   :  { %v118_v22 = vadd.f32 %v117_v21, %v46_v20  ;;  %v2540_v23 = vpop.f32.mrb[1].mxu0 }
 0x16d   :  { %v124_v24 = vsel %vm123_vm3, %v118_v22, 0.0  ;;  %v220_v46 = vpop.f32.mrb[0].mxu1 }
 0x16e   :  { %125 = vadd.xlane.f32.xlu0 %v124_v24  ;;  %v2545_v47 = vpop.f32.mrb[1].mxu1  ;;  %v3124_v3 = vmul.f32 -1e+09, %v220_v46 }
 0x1fb   :  { %v126_v25 = vpop.xlane.xlu0 %125 }
 0x1fc   :  { %v128_v26 = vmul.f32 0.03125, %v126_v25 }
 0x1fe   :  { %v129_v27 = vsub.f32 %v118_v22, %v128_v26 }
 0x200   :  { %v130_v28 = vmul.f32 %v129_v27, %v129_v27 }
 0x202   :  { %v131_v29 = vsel %vm123_vm3, %v130_v28, 0.0 }
 0x203   :  { %132 = vadd.xlane.f32.xlu1 %v131_v29 }
 0x290   :  { %v133_v37 = vpop.xlane.xlu1 %132 }
 0x291   :  { %v134_v38 = vmul.f32 0.03125, %v133_v37 }
 0x293   :  { %v135_v39 = vadd.f32 1e-12, %v134_v38 }
 0x295   :  { %2842 = vrsqrt.f32 %v135_v39 }
 0x29f   :  { %v2843_v40 = vpop.eup %2842 }
 0x2a0   :  { %v137_v42 = vmul.f32 %v2843_v40, %v129_v27 }
 0x2a2   :  { %v142_v44 = vmul.f32 %v2386_v41, %v137_v42 }
 0x2a4   :  { %v3055_v45 = vadd.f32 %v2387_v43, %v142_v44 }
 0x2a6   :  { %2555 = vmatmul.mubr.msk.f32.vlgmr.msra.gmra.mrb[2].mxu1 %vm123_vm3, %v3055_v45 }
 0x2a7   :  { %2559 = vmatprep.mubr.msk.f32.mxu1 %vm2942_vm0, %v2941_v2 }
 0x379   :  { %v319_v52 = vpop.f32.mrb[2].mxu1 }
 0x37a   :  { %v3069_v53 = vadd.f32 %v319_v52, %v249_v51  ;;  %v2556_v54 = vpop.f32.mrb[3].mxu1  ;;  %v2802_v51 = vpack.i.bf16 %v3033_v31, %v3031_v30  ;;  %v2807_v52 = vpack.i.bf16 %v3044_v35, %v3042_v34 }
 0x37c   :  { %325 = vrot.lane.b32.xlu1 %v3069_v53, %s2943_s1  ;;  %v323_v57 = vsel %vm226_vm7, %v3069_v53, 0.0  ;;  %v654_v58 = vsel %vm3076_vm8, %v3069_v53, 0.0  ;;  %v420_v61 = vsel %vm3094_vm13, %v3069_v53, 0.0  ;;  %v816_v62 = vsel %vm3100_vm14, %v3069_v53, 0.0 }
 0x3ee   :  { %v326_v55 = vpop.permute.xlu1 %325 }
 0x3ef   :  { %2558 = vmatpush3.xpose.msk.msra.mxu1 %vm123_vm3, %v326_v55  ;;  %2578 = vmatpush3.xpose.msk.msra.mxu0 %vm123_vm3, %v326_v55 }
 0x3f0   :  { %2562 = vmatprep.subr.mxu1 %v2941_v2  ;;  %2587 = vmatprep.subr.mxu0 %v2941_v2 }
 0x3f2   :  { %2560 = vmatmul.mubr.msk.f32.vlgmr.msra.gmra.mrb[4].mxu1 %vm123_vm3, %v323_v57  ;;  %2580 = vmatmul.mubr.msk.f32.vlgmr.msra.gmra.mrb[2].mxu0 %vm123_vm3, %v654_v58 }
 0x3f3   :  { %2563 = vmatpush3.xpose.msk.msra.mxu1 %vm123_vm3, %v326_v55  ;;  %2588 = vmatpush3.xpose.msk.msra.mxu0 %vm123_vm3, %v326_v55 }
 0x3f4   :  { %2564 = vmatprep.mubr.msk.f32.mxu1 %vm2942_vm0, %v2941_v2  ;;  %2589 = vmatprep.mubr.msk.f32.mxu0 %vm2942_vm0, %v2941_v2 }
 0x3f5   :  { %2567 = vmatprep.subr.mxu1 %v2941_v2  ;;  %2732 = vmatprep.subr.bf16.mxu0 %v2940_v1 }
 0x3f6   :  { %2565 = vmatmul.mubr.msk.f32.vlgmr.msra.gmra.mrb[6].mxu1 %vm123_vm3, %v420_v61  ;;  %2590 = vmatmul.mubr.msk.f32.vlgmr.msra.gmra.mrb[4].mxu0 %vm123_vm3, %v816_v62 }
 0x3f7   :  { %2569 = vmatprep.mubr.msk.f32.mxu1 %vm2942_vm0, %v2941_v2  ;;  %2605 = vmatprep.mubr.msk.f32.mxu0 %vm2942_vm0, %v2941_v2 }
 0x4c5   :  { %v398_v63 = vpop.f32.mrb[4].mxu1  ;;  %v724_v0 = vpop.f32.mrb[2].mxu0 }
 0x4c6   :  { %v402_v4 = vmul.f32 0.35355338, %v398_v63  ;;  %v2561_v5 = vpop.f32.mrb[5].mxu1  ;;  %v2581_v6 = vpop.f32.mrb[3].mxu0  ;;  %v728_v7 = vmul.f32 0.35355338, %v724_v0 }
 0x4c8   :  { %v403_v8 = vadd.f32 %v402_v4, %v3124_v3  ;;  %v729_v16 = vadd.f32 %v728_v7, %v3124_v3 }
 0x4c9   :  { %v490_v9 = vpop.f32.mrb[6].mxu1  ;;  %v886_v10 = vpop.f32.mrb[4].mxu0 }
 0x4ca   :  { %v494_v11 = vmul.f32 0.35355338, %v490_v9  ;;  %v2566_v12 = vpop.f32.mrb[7].mxu1  ;;  %v2591_v13 = vpop.f32.mrb[5].mxu0  ;;  %v890_v14 = vmul.f32 0.35355338, %v886_v10 }
 0x4cb   :  { %v405_v15 = vsel %vm404_vm15, %v403_v8, -inf  ;;  %v730_v20 = vsel %vm404_vm15, %v729_v16, -inf }
 0x4cc   :  { %406 = vmax.xlane.f32.xlu0 %v405_v15  ;;  %v495_v18 = vadd.f32 %v494_v11, %v3124_v3  ;;  %v891_v21 = vadd.f32 %v890_v14, %v3124_v3  ;;  %v980_v14 = vsub.s32 1, %v3061_v48 }
 0x4ce   :  { %v496_v19 = vsel %vm404_vm15, %v495_v18, -inf  ;;  %v892_v22 = vsel %vm404_vm15, %v891_v21, -inf  ;;  %v981_v15 = vrot.slane %v3064_v50, %v980_v14 }
 0x4cf   :  { %497 = vmax.xlane.f32.xlu1 %v496_v19 }
 0x4d0   :  { %731 = vmax.xlane.f32.xlu0 %v730_v20 }
 0x4d4   :  { %893 = vmax.xlane.f32.xlu0 %v892_v22 }
 0x559   :  { %v407_v23 = vpop.xlane.xlu0 %406 }
 0x55a   :  { %v408_v24 = vsub.f32 %v403_v8, %v407_v23 }
 0x55c   :  { %v409_v25 = vmul.f32 1.442695, %v408_v24  ;;  %v498_v26 = vpop.xlane.xlu1 %497 }
 0x55d   :  { %v499_v27 = vsub.f32 %v495_v18, %v498_v26  ;;  %v732_v28 = vpop.xlane.xlu0 %731 }
 0x55e   :  { %2844 = vpow2.f32 %v409_v25  ;;  %v733_v29 = vsub.f32 %v729_v16, %v732_v28  ;;  %v240_v28 = vld [vmem:[#allocation2 + $0x18] sm:$0xff] }
 0x55f   :  { %v500_v32 = vmul.f32 1.442695, %v499_v27  ;;  %v238_v27 = vld [vmem:[#allocation2 + $0x8] sm:$0xff] }
 0x560   :  { %v734_v33 = vmul.f32 1.442695, %v733_v29  ;;  %v2739_v29 = vpack.c.bf16 %v240_v28, %v238_v27 }
 0x561   :  { %v894_v36 = vpop.xlane.xlu0 %893 }
 0x562   :  { %2846 = vpow2.f32 %v734_v33  ;;  %v895_v37 = vsub.f32 %v891_v21, %v894_v36  ;;  %v244_v33 = vld [vmem:[#allocation2 + $0x38] sm:$0xff] }
 0x563   :  { %2848 = vpow2.f32 %v500_v32  ;;  %v242_v32 = vld [vmem:[#allocation2 + $0x28] sm:$0xff] }
 0x564   :  { %v896_v38 = vmul.f32 1.442695, %v895_v37  ;;  %v2742_v36 = vpack.c.bf16 %v244_v33, %v242_v32  ;;  %v2817_v37 = vpack.i.bf16 %v244_v33, %v242_v32  ;;  %v3228_v33 = vld [vmem:[#allocation2 + $0x70] sm:$0xff] }
 0x566   :  { %2850 = vpow2.f32 %v896_v38 }
 0x568   :  { %v2845_v39 = vpop.eup %2844 }
 0x569   :  { %v411_v40 = vsel %vm404_vm15, %v2845_v39, 0.0 }
 0x56a   :  { %412 = vadd.xlane.f32.xlu0 %v411_v40 }
 0x56c   :  { %v2847_v41 = vpop.eup %2846 }
 0x56d   :  { %v736_v42 = vsel %vm404_vm15, %v2847_v41, 0.0  ;;  %v2849_v43 = vpop.eup %2848 }
 0x56e   :  { %737 = vadd.xlane.f32.xlu0 %v736_v42  ;;  %v502_v46 = vsel %vm404_vm15, %v2849_v43, 0.0  ;;  %v1092_v42 = vsub.s32 3, %v3061_v48 }
 0x570   :  { %v2851_v44 = vpop.eup %2850 }
 0x571   :  { %v898_v47 = vsel %vm404_vm15, %v2851_v44, 0.0 }
 0x572   :  { %503 = vadd.xlane.f32.xlu0 %v502_v46  ;;  %899 = vadd.xlane.f32.xlu1 %v898_v47  ;;  %v1093_v47 = vrot.slane %v3064_v50, %v1092_v42 }
 0x583   :  { %2803 = vrot.lane.b32.xlu1 %v2802_v51, %s2945_s22 }
 0x587   :  { %2808 = vrot.lane.b32.xlu1 %v2807_v52, %s2945_s22 }
 0x588   :  { %416 = vrot.lane.b32.xlu0 %v3069_v53, %s2944_s21 }
 0x5f7   :  { %v413_v54 = vpop.xlane.xlu0 %412 }
 0x5fb   :  { %v738_v55 = vpop.xlane.xlu0 %737 }
 0x5ff   :  { %v504_v57 = vpop.xlane.xlu0 %503  ;;  %v900_v53 = vpop.xlane.xlu1 %899 }
 0x600   :  { %2852 = vrcp.f32 %v504_v57 }
 0x601   :  { %2854 = vrcp.f32 %v413_v54 }
 0x602   :  { %2856 = vrcp.f32 %v738_v55 }
 0x603   :  { %v417_v58 = vpop.permute.xlu0 %416  ;;  %2858 = vrcp.f32 %v900_v53  ;;  %v2804_v62 = vpop.permute.xlu1 %2803 }
 0x604   :  { %2568 = vmatpush3.msk.msra.mxu1 %vm3094_vm13, %v417_v58  ;;  %v2806_v63 = vunpack.i.h.bf16 %v2804_v62  ;;  %v2805_v0 = vunpack.i.l.bf16 %v2804_v62 }
 0x605   :  { %2572 = vmatprep.subr.mxu1 %v2941_v2 }
 0x606   :  { %v2733_v5 = vpack.c.bf16 %v2806_v63, %v2805_v0 }
 0x607   :  { %v2809_v6 = vpop.permute.xlu1 %2808 }
 0x608   :  { %v2811_v7 = vunpack.i.h.bf16 %v2809_v6  ;;  %v2810_v8 = vunpack.i.l.bf16 %v2809_v6  ;;  %2734 = vmatpush3.bf16.msra.mxu0 %v2733_v5 }
 0x609   :  { %2735 = vmatprep.subr.bf16.mxu0 %v2940_v1 }
 0x60a   :  { %v2853_v30 = vpop.eup %2852  ;;  %v2736_v10 = vpack.c.bf16 %v2811_v7, %v2810_v8 }
 0x60b   :  { %v506_v31 = vmul.f32 %v2853_v30, %v2849_v43  ;;  %v2855_v34 = vpop.eup %2854 }
 0x60c   :  { %v415_v35 = vmul.f32 %v2855_v34, %v2845_v39  ;;  %v2857_v61 = vpop.eup %2856  ;;  %2737 = vmatpush3.bf16.msra.mxu0 %v2736_v10 }
 0x60d   :  { %2570 = vmatmul.mubr.msk.f32.vlgmr.msra.gmra.mrb[8].mxu1 %vm404_vm15, %v506_v31  ;;  %v740_v4 = vmul.f32 %v2857_v61, %v2847_v41  ;;  %v2859_v9 = vpop.eup %2858  ;;  %2744 = vmatprep.subr.bf16.mxu0 %v2940_v1  ;;  %v1087_v41 = vsub.s32 2, %v3061_v48  ;;  %v1097_v61 = vsub.s32 4, %v3061_v48 }
 0x60e   :  { %2573 = vmatpush3.msk.msra.mxu1 %vm226_vm7, %v417_v58  ;;  %2574 = vmatprep.mubr.msk.f32.mxu1 %vm2942_vm0, %v2941_v2  ;;  %v902_v11 = vmul.f32 %v2859_v9, %v2851_v44 }
 0x60f   :  { %2582 = vmatprep.subr.mxu1 %v2941_v2  ;;  %v1088_v43 = vrot.slane %v3064_v50, %v1087_v41  ;;  %v1098_v62 = vrot.slane %v3064_v50, %v1097_v61 }
 0x615   :  { %2575 = vmatmul.mubr.msk.f32.vlgmr.msra.gmra.mrb[8].mxu1 %vm404_vm15, %v415_v35 }
 0x616   :  { %2583 = vmatpush3.msk.msra.mxu1 %vm3076_vm8, %v417_v58  ;;  %2584 = vmatprep.mubr.msk.f32.mxu1 %vm2942_vm0, %v2941_v2 }
 0x617   :  { %2592 = vmatprep.subr.mxu1 %v2941_v2 }
 0x61d   :  { %2585 = vmatmul.mubr.msk.f32.vlgmr.msra.gmra.mrb[8].mxu1 %vm404_vm15, %v740_v4 }
 0x61e   :  { %2593 = vmatpush3.msk.msra.mxu1 %vm3100_vm14, %v417_v58  ;;  %2594 = vmatprep.mubr.msk.f32.mxu1 %vm2942_vm0, %v2941_v2 }
 0x61f   :  { %2738 = vmatprep.subr.bf16.mxu1 %v2940_v1 }
 0x625   :  { %2595 = vmatmul.mubr.msk.f32.vlgmr.msra.gmra.mrb[8].mxu1 %vm404_vm15, %v902_v11 }
 0x626   :  { %2616 = vmatprep.mubr.msk.f32.mxu1 %vm2942_vm0, %v2941_v2  ;;  %2740 = vmatpush3.bf16.msra.mxu1 %v2739_v29  ;;  %v3224_v29 = vld [vmem:[#allocation2 + $0x60] sm:$0xff] }
 0x627   :  { %2741 = vmatprep.subr.bf16.mxu1 %v2940_v1 }
 0x62a   :  { %2743 = vmatpush3.bf16.msra.mxu1 %v2742_v36  ;;  %v3230_v36 = vld [vmem:[#allocation2 + $0x80] sm:$0xff] }
 0x62b   :  { %2752 = vmatprep.subr.bf16.mxu1 %v2940_v1 }
 0x6f8   :  { %v973_v12 = vpop.f32.mrb[8].mxu1 }
 0x6f9   :  { %v2596_v13 = vpop.f32.mrb[9].mxu1  ;;  %2606 = vmatmul.mubr.msk.f32.vlgmr.msra.gmra.mrb[6].mxu0 %vm123_vm3, %v973_v12 }
 0x6fa   :  { %2627 = vmatprep.mubr.msk.f32.mxu0 %vm2942_vm0, %v2941_v2 }
 0x7cc   :  { %v1067_v16 = vpop.f32.mrb[6].mxu0 }
 0x7cd   :  { %v1068_v18 = vadd.f32 %v1067_v16, %v981_v15  ;;  %v2607_v19 = vpop.f32.mrb[7].mxu0  ;;  %v1183_v15 = vsub.s32 5, %v3061_v48 }
 0x7cf   :  { %v1071_v20 = vadd.f32 %v1068_v18, %v3055_v45  ;;  %v2812_v45 = vpack.i.bf16 %v240_v28, %v238_v27  ;;  %v1184_v16 = vrot.slane %v3064_v50, %v1183_v15  ;;  %v3222_v28 = vld [vmem:[#allocation2 + $0x50] sm:$0xff] }
 0x7d0   :  { %v2753_v32 = vpack.c.bf16 %v3224_v29, %v3222_v28 }
 0x7d1   :  { %v1072_v21 = vsel %vm123_vm3, %v1071_v20, 0.0 }
 0x7d2   :  { %1073 = vadd.xlane.f32.xlu0 %v1072_v21 }
 0x7e8   :  { %2813 = vrot.lane.b32.xlu0 %v2812_v45, %s2944_s21  ;;  %v2756_v45 = vpack.c.bf16 %v3230_v36, %v3228_v33 }
 0x85f   :  { %v1074_v22 = vpop.xlane.xlu0 %1073 }
 0x860   :  { %v1075_v23 = vmul.f32 0.03125, %v1074_v22 }
 0x862   :  { %v1076_v24 = vsub.f32 %v1071_v20, %v1075_v23 }
 0x863   :  { %v2814_v54 = vpop.permute.xlu0 %2813 }
 0x864   :  { %v1077_v25 = vmul.f32 %v1076_v24, %v1076_v24  ;;  %v2816_v55 = vunpack.i.h.bf16 %v2814_v54  ;;  %v2815_v57 = vunpack.i.l.bf16 %v2814_v54 }
 0x866   :  { %v1078_v26 = vsel %vm123_vm3, %v1077_v25, 0.0  ;;  %v2745_v58 = vpack.c.bf16 %v2816_v55, %v2815_v57  ;;  %v3250_v55 = vld [vmem:[#allocation2 + $0x90] sm:$0xff] }
 0x867   :  { %1079 = vadd.xlane.f32.xlu1 %v1078_v26  ;;  %v1315_v57 = vrot.slane %v3250_v55, %v248_v49  ;;  %v2249_v30 = vrot.slane %v3250_v55, %v1183_v15 }
 0x868   :  { %2747 = vmatpush3.bf16.xpose.msk.msra.mxu0 %vm3199_vm2, %v2745_v58 }
 0x869   :  { %2748 = vmatprep.subr.bf16.mxu0 %v2940_v1 }
 0x878   :  { %2818 = vrot.lane.b32.xlu1 %v2817_v37, %s2944_s21 }
 0x8f4   :  { %v1080_v38 = vpop.xlane.xlu1 %1079 }
 0x8f5   :  { %v1081_v39 = vmul.f32 0.03125, %v1080_v38 }
 0x8f7   :  { %v1082_v40 = vadd.f32 1e-12, %v1081_v39 }
 0x8f8   :  { %v2819_v31 = vpop.permute.xlu1 %2818 }
 0x8f9   :  { %2860 = vrsqrt.f32 %v1082_v40  ;;  %v2821_v34 = vunpack.i.h.bf16 %v2819_v31  ;;  %v2820_v35 = vunpack.i.l.bf16 %v2819_v31  ;;  %v1294_v40 = vsub.s32 6, %v3061_v48 }
 0x8fb   :  { %v2749_v53 = vpack.c.bf16 %v2821_v34, %v2820_v35  ;;  %v2360_v15 = vrot.slane %v3250_v55, %v1294_v40 }
 0x8fd   :  { %2751 = vmatpush3.bf16.xpose.msk.msra.mxu0 %vm3199_vm2, %v2749_v53 }
 0x8fe   :  { %2646 = vmatprep.subr.mxu0 %v2941_v2 }
 0x903   :  { %v2861_v44 = vpop.eup %2860 }
 0x904   :  { %v1084_v46 = vmul.f32 %v2861_v44, %v1076_v24  ;;  %v1295_v44 = vrot.slane %v3064_v50, %v1294_v40 }
 0x906   :  { %v1089_v51 = vmul.f32 %v1088_v43, %v1084_v46  ;;  %v1299_v43 = vsub.s32 7, %v3061_v48 }
 0x908   :  { %v1094_v52 = vadd.f32 %v1093_v47, %v1089_v51  ;;  %v1300_v51 = vrot.slane %v3064_v50, %v1299_v43 }
 0x90a   :  { %2617 = vmatmul.mubr.msk.f32.vlgmr.msra.gmra.mrb[10].mxu1 %vm123_vm3, %v1094_v52 }
 0x90b   :  { %2638 = vmatprep.mubr.msk.f32.mxu1 %vm2942_vm0, %v2941_v2  ;;  %2754 = vmatpush3.bf16.msra.mxu1 %v2753_v32 }
 0x90c   :  { %2755 = vmatprep.subr.bf16.mxu1 %v2940_v1 }
 0x90f   :  { %2757 = vmatpush3.bf16.msra.mxu1 %v2756_v45 }
 0x910   :  { %2641 = vmatprep.subr.mxu1 %v2941_v2 }
 0x9dd   :  { %v1168_v63 = vpop.f32.mrb[10].mxu1 }
 0x9de   :  { %v1169_v0 = vadd.f32 %v1168_v63, %v1098_v62  ;;  %v2618_v4 = vpop.f32.mrb[11].mxu1 }
 0x9e0   :  { %v1172_v5 = vmul.f32 %v1169_v0, %v1169_v0 }
 0x9e2   :  { %v1173_v6 = vmul.f32 %v1172_v5, %v1169_v0 }
 0x9e4   :  { %v1174_v7 = vmul.f32 0.044715, %v1173_v6 }
 0x9e6   :  { %v1175_v8 = vadd.f32 %v1174_v7, %v1169_v0 }
 0x9e8   :  { %v1176_v9 = vmul.f32 0.7978846, %v1175_v8 }
 0x9ea   :  { %2862 = vtanh.f32 %v1176_v9 }
 0x9f4   :  { %v2863_v10 = vpop.eup %2862 }
 0x9f5   :  { %v1178_v11 = vadd.f32 1.0, %v2863_v10 }
 0x9f7   :  { %v1179_v12 = vmul.f32 0.5, %v1178_v11 }
 0x9f9   :  { %v1180_v13 = vmul.f32 %v1179_v12, %v1169_v0 }
 0x9fb   :  { %2628 = vmatmul.mubr.msk.f32.vlgmr.msra.gmra.mrb[8].mxu0 %vm47_vm1, %v1180_v13 }
 0x9fc   :  { %2648 = vmatprep.mubr.msk.f32.mxu0 %vm2942_vm0, %v2941_v2 }
 0xace   :  { %v1274_v18 = vpop.f32.mrb[8].mxu0 }
 0xacf   :  { %v1275_v19 = vadd.f32 %v1274_v18, %v1184_v16  ;;  %v2629_v20 = vpop.f32.mrb[9].mxu0 }
 0xad1   :  { %v1278_v21 = vadd.f32 %v1275_v19, %v1094_v52 }
 0xad3   :  { %v1279_v22 = vsel %vm123_vm3, %v1278_v21, 0.0 }
 0xad4   :  { %1280 = vadd.xlane.f32.xlu0 %v1279_v22 }
 0xb61   :  { %v1281_v23 = vpop.xlane.xlu0 %1280 }
 0xb62   :  { %v1282_v24 = vmul.f32 0.03125, %v1281_v23 }
 0xb64   :  { %v1283_v25 = vsub.f32 %v1278_v21, %v1282_v24 }
 0xb66   :  { %v1284_v26 = vmul.f32 %v1283_v25, %v1283_v25 }
 0xb68   :  { %v1285_v27 = vsel %vm123_vm3, %v1284_v26, 0.0 }
 0xb69   :  { %1286 = vadd.xlane.f32.xlu1 %v1285_v27 }
 0xbf6   :  { %v1287_v37 = vpop.xlane.xlu1 %1286 }
 0xbf7   :  { %v1288_v38 = vmul.f32 0.03125, %v1287_v37 }
 0xbf9   :  { %v1289_v39 = vadd.f32 1e-12, %v1288_v38 }
 0xbfb   :  { %2864 = vrsqrt.f32 %v1289_v39 }
 0xc05   :  { %v2865_v46 = vpop.eup %2864 }
 0xc06   :  { %v1291_v47 = vmul.f32 %v2865_v46, %v1283_v25 }
 0xc08   :  { %v1296_v52 = vmul.f32 %v1295_v44, %v1291_v47 }
 0xc0a   :  { %v3244_v54 = vadd.f32 %v1300_v51, %v1296_v52 }
 0xc0c   :  { %2639 = vmatmul.mubr.msk.f32.vlgmr.msra.gmra.mrb[12].mxu1 %vm123_vm3, %v3244_v54 }
 0xc0d   :  { %2643 = vmatprep.mubr.msk.f32.mxu1 %vm2942_vm0, %v2941_v2 }
 0xcdf   :  { %v1385_v58 = vpop.f32.mrb[12].mxu1 }
 0xce0   :  { %v3255_v31 = vadd.f32 %v1385_v58, %v1315_v57  ;;  %v2640_v34 = vpop.f32.mrb[13].mxu1 }
 0xce2   :  { %1391 = vrot.lane.b32.xlu0 %v3255_v31, %s2943_s1  ;;  %v1389_v49 = vsel %vm226_vm7, %v3255_v31, 0.0  ;;  %v1485_v35 = vsel %vm3094_vm13, %v3255_v31, 0.0  ;;  %v1719_v53 = vsel %vm3076_vm8, %v3255_v31, 0.0  ;;  %v1881_v62 = vsel %vm3100_vm14, %v3255_v31, 0.0 }
 0xd54   :  { %v1392_v50 = vpop.permute.xlu0 %1391 }
 0xd55   :  { %2642 = vmatpush3.xpose.msk.msra.mxu1 %vm123_vm3, %v1392_v50  ;;  %2647 = vmatpush3.xpose.msk.msra.mxu0 %vm123_vm3, %v1392_v50 }
 0xd56   :  { %2661 = vmatprep.subr.mxu0 %v2941_v2  ;;  %2651 = vmatprep.subr.mxu1 %v2941_v2 }
 0xd58   :  { %2644 = vmatmul.mubr.msk.f32.vlgmr.msra.gmra.mrb[14].mxu1 %vm123_vm3, %v1389_v49  ;;  %2649 = vmatmul.mubr.msk.f32.vlgmr.msra.gmra.mrb[10].mxu0 %vm123_vm3, %v1485_v35 }
 0xd59   :  { %2662 = vmatpush3.xpose.msk.msra.mxu0 %vm123_vm3, %v1392_v50  ;;  %2663 = vmatprep.mubr.msk.f32.mxu0 %vm2942_vm0, %v2941_v2 }
 0xd5a   :  { %2671 = vmatprep.subr.mxu0 %v2941_v2  ;;  %2653 = vmatprep.mubr.msk.f32.mxu1 %vm2942_vm0, %v2941_v2 }
 0xd5c   :  { %2664 = vmatmul.mubr.msk.f32.vlgmr.msra.gmra.mrb[12].mxu0 %vm123_vm3, %v1719_v53  ;;  %v2822_v53 = vpack.i.bf16 %v3224_v29, %v3222_v28 }
 0xd5d   :  { %2672 = vmatpush3.xpose.msk.msra.mxu0 %vm123_vm3, %v1392_v50  ;;  %2673 = vmatprep.mubr.msk.f32.mxu0 %vm2942_vm0, %v2941_v2 }
 0xd5e   :  { %2758 = vmatprep.subr.bf16.mxu0 %v2940_v1 }
 0xd60   :  { %2674 = vmatmul.mubr.msk.f32.vlgmr.msra.gmra.mrb[14].mxu0 %vm123_vm3, %v1881_v62  ;;  %v2827_v62 = vpack.i.bf16 %v3230_v36, %v3228_v33 }
 0xd61   :  { %2689 = vmatprep.mubr.msk.f32.mxu0 %vm2942_vm0, %v2941_v2 }
 0xe2b   :  { %v1464_v63 = vpop.f32.mrb[14].mxu1  ;;  %v1555_v0 = vpop.f32.mrb[10].mxu0 }
 0xe2c   :  { %v1468_v4 = vmul.f32 0.35355338, %v1464_v63  ;;  %v1559_v5 = vmul.f32 0.35355338, %v1555_v0  ;;  %v2645_v6 = vpop.f32.mrb[15].mxu1  ;;  %v2650_v7 = vpop.f32.mrb[11].mxu0 }
 0xe2e   :  { %v1560_v8 = vadd.f32 %v1559_v5, %v3124_v3  ;;  %v1469_v13 = vadd.f32 %v1468_v4, %v3124_v3 }
 0xe2f   :  { %v1789_v9 = vpop.f32.mrb[12].mxu0 }
 0xe30   :  { %v1793_v10 = vmul.f32 0.35355338, %v1789_v9  ;;  %v2665_v11 = vpop.f32.mrb[13].mxu0  ;;  %v1561_v12 = vsel %vm404_vm15, %v1560_v8, -inf  ;;  %v1470_v20 = vsel %vm404_vm15, %v1469_v13, -inf }
 0xe31   :  { %1562 = vmax.xlane.f32.xlu1 %v1561_v12 }
 0xe32   :  { %v1794_v21 = vadd.f32 %v1793_v10, %v3124_v3 }
 0xe33   :  { %v1951_v16 = vpop.f32.mrb[14].mxu0 }
 0xe34   :  { %v1955_v18 = vmul.f32 0.35355338, %v1951_v16  ;;  %v2675_v19 = vpop.f32.mrb[15].mxu0  ;;  %v1795_v22 = vsel %vm404_vm15, %v1794_v21, -inf }
 0xe35   :  { %1471 = vmax.xlane.f32.xlu1 %v1470_v20  ;;  %v2046_v19 = vrot.slane %v3250_v55, %v980_v14  ;;  %v1308_v14 = vld [vmem:[#allocation2 + $0x78] sm:$0xff] }
 0xe36   :  { %v1956_v23 = vadd.f32 %v1955_v18, %v3124_v3 }
 0xe38   :  { %v1957_v24 = vsel %vm404_vm15, %v1956_v23, -inf }
 0xe39   :  { %1796 = vmax.xlane.f32.xlu1 %v1795_v22 }
 0xe3d   :  { %1958 = vmax.xlane.f32.xlu1 %v1957_v24 }
 0xebe   :  { %v1563_v25 = vpop.xlane.xlu1 %1562 }
 0xebf   :  { %v1564_v26 = vsub.f32 %v1560_v8, %v1563_v25 }
 0xec1   :  { %v1565_v27 = vmul.f32 1.442695, %v1564_v26 }
 0xec2   :  { %v1472_v32 = vpop.xlane.xlu1 %1471 }
 0xec3   :  { %2866 = vpow2.f32 %v1565_v27  ;;  %v1473_v45 = vsub.f32 %v1469_v13, %v1472_v32 }
 0xec5   :  { %v1474_v37 = vmul.f32 1.442695, %v1473_v45 }
 0xec6   :  { %v1797_v38 = vpop.xlane.xlu1 %1796 }
 0xec7   :  { %2868 = vpow2.f32 %v1474_v37  ;;  %v1798_v39 = vsub.f32 %v1794_v21, %v1797_v38  ;;  %v1306_v37 = vld [vmem:[#allocation2 + $0x68] sm:$0xff] }
 0xec9   :  { %v1799_v44 = vmul.f32 1.442695, %v1798_v39  ;;  %v1310_v39 = vld [vmem:[#allocation2 + $0x88] sm:$0xff] }
 0xeca   :  { %v1959_v46 = vpop.xlane.xlu1 %1958 }
 0xecb   :  { %2870 = vpow2.f32 %v1799_v44  ;;  %v1960_v47 = vsub.f32 %v1956_v23, %v1959_v46  ;;  %v2768_v44 = vpack.c.bf16 %v1310_v39, %v1308_v14  ;;  %v2837_v46 = vpack.i.bf16 %v1310_v39, %v1308_v14 }
 0xecd   :  { %v2867_v51 = vpop.eup %2866  ;;  %v1961_v3 = vmul.f32 1.442695, %v1960_v47 }
 0xece   :  { %v1567_v52 = vsel %vm404_vm15, %v2867_v51, 0.0 }
 0xecf   :  { %2872 = vpow2.f32 %v1961_v3  ;;  %1568 = vadd.xlane.f32.xlu0 %v1567_v52  ;;  %v2153_v52 = vrot.slane %v3250_v55, %v1087_v41 }
 0xed1   :  { %v2869_v57 = vpop.eup %2868 }
 0xed2   :  { %v1476_v58 = vsel %vm404_vm15, %v2869_v57, 0.0 }
 0xed3   :  { %1477 = vadd.xlane.f32.xlu1 %v1476_v58 }
 0xed5   :  { %v2871_v34 = vpop.eup %2870 }
 0xed6   :  { %v1801_v50 = vsel %vm404_vm15, %v2871_v34, 0.0 }
 0xed7   :  { %1802 = vadd.xlane.f32.xlu1 %v1801_v50 }
 0xed9   :  { %v2873_v49 = vpop.eup %2872 }
 0xeda   :  { %v1963_v35 = vsel %vm404_vm15, %v2873_v49, 0.0 }
 0xedb   :  { %1964 = vadd.xlane.f32.xlu1 %v1963_v35 }
 0xee5   :  { %2828 = vrot.lane.b32.xlu0 %v2827_v62, %s2945_s22 }
 0xeec   :  { %1481 = vrot.lane.b32.xlu1 %v3255_v31, %s2944_s21 }
 0xef0   :  { %2823 = vrot.lane.b32.xlu1 %v2822_v53, %s2945_s22 }
 0xf5c   :  { %v1569_v63 = vpop.xlane.xlu0 %1568 }
 0xf5d   :  { %2874 = vrcp.f32 %v1569_v63 }
 0xf60   :  { %v1478_v0 = vpop.xlane.xlu1 %1477  ;;  %v2829_v33 = vpop.permute.xlu0 %2828 }
 0xf61   :  { %2876 = vrcp.f32 %v1478_v0  ;;  %v2831_v10 = vunpack.i.h.bf16 %v2829_v33  ;;  %v2830_v11 = vunpack.i.l.bf16 %v2829_v33 }
 0xf63   :  { %v2762_v56 = vpack.c.bf16 %v2831_v10, %v2830_v11 }
 0xf64   :  { %v1803_v4 = vpop.xlane.xlu1 %1802 }
 0xf65   :  { %2878 = vrcp.f32 %v1803_v4 }
 0xf67   :  { %v2875_v6 = vpop.eup %2874 }
 0xf68   :  { %v1965_v5 = vpop.xlane.xlu1 %1964  ;;  %v1571_v7 = vmul.f32 %v2875_v6, %v2867_v51 }
 0xf69   :  { %2880 = vrcp.f32 %v1965_v5 }
 0xf6b   :  { %v2877_v28 = vpop.eup %2876 }
 0xf6c   :  { %v1482_v8 = vpop.permute.xlu1 %1481  ;;  %v1480_v29 = vmul.f32 %v2877_v28, %v2869_v57 }
 0xf6d   :  { %2652 = vmatpush3.msk.msra.mxu1 %vm3094_vm13, %v1482_v8 }
 0xf6e   :  { %2654 = vmatmul.mubr.msk.f32.vlgmr.msra.gmra.mrb[16].mxu1 %vm404_vm15, %v1571_v7  ;;  %2656 = vmatprep.subr.mxu1 %v2941_v2 }
 0xf6f   :  { %2657 = vmatpush3.msk.msra.mxu1 %vm226_vm7, %v1482_v8  ;;  %2658 = vmatprep.mubr.msk.f32.mxu1 %vm2942_vm0, %v2941_v2  ;;  %v2879_v17 = vpop.eup %2878 }
 0xf70   :  { %2666 = vmatprep.subr.mxu1 %v2941_v2  ;;  %v2824_v59 = vpop.permute.xlu1 %2823  ;;  %v1805_v9 = vmul.f32 %v2879_v17, %v2871_v34  ;;  %v2158_v34 = vrot.slane %v3250_v55, %v1092_v42  ;;  %v2163_v42 = vrot.slane %v3250_v55, %v1097_v61 }
 0xf71   :  { %v2826_v36 = vunpack.i.h.bf16 %v2824_v59  ;;  %v2825_v31 = vunpack.i.l.bf16 %v2824_v59 }
 0xf73   :  { %v2759_v12 = vpack.c.bf16 %v2826_v36, %v2825_v31  ;;  %v2881_v13 = vpop.eup %2880 }
 0xf74   :  { %v1967_v16 = vmul.f32 %v2881_v13, %v2873_v49 }
 0xf75   :  { %2760 = vmatpush3.bf16.msra.mxu0 %v2759_v12 }
 0xf76   :  { %2659 = vmatmul.mubr.msk.f32.vlgmr.msra.gmra.mrb[16].mxu1 %vm404_vm15, %v1480_v29  ;;  %2761 = vmatprep.subr.bf16.mxu0 %v2940_v1 }
 0xf77   :  { %2667 = vmatpush3.msk.msra.mxu1 %vm3076_vm8, %v1482_v8  ;;  %2668 = vmatprep.mubr.msk.f32.mxu1 %vm2942_vm0, %v2941_v2 }
 0xf78   :  { %2676 = vmatprep.subr.mxu1 %v2941_v2 }
 0xf79   :  { %2763 = vmatpush3.bf16.msra.mxu0 %v2762_v56 }
 0xf7a   :  { %2770 = vmatprep.subr.bf16.mxu0 %v2940_v1 }
 0xf7e   :  { %2669 = vmatmul.mubr.msk.f32.vlgmr.msra.gmra.mrb[16].mxu1 %vm404_vm15, %v1805_v9 }
 0xf7f   :  { %2677 = vmatpush3.msk.msra.mxu1 %vm3100_vm14, %v1482_v8  ;;  %2678 = vmatprep.mubr.msk.f32.mxu1 %vm2942_vm0, %v2941_v2 }
 0xf80   :  { %2764 = vmatprep.subr.bf16.mxu1 %v2940_v1 }
 0xf86   :  { %2679 = vmatmul.mubr.msk.f32.vlgmr.msra.gmra.mrb[16].mxu1 %vm404_vm15, %v1967_v16 }
 0xf87   :  { %2700 = vmatprep.mubr.msk.f32.mxu1 %vm2942_vm0, %v2941_v2 }
0x1059   :  { %v2038_v60 = vpop.f32.mrb[16].mxu1 }
0x105a   :  { %v2680_v18 = vpop.f32.mrb[17].mxu1  ;;  %2690 = vmatmul.mubr.msk.f32.vlgmr.msra.gmra.mrb[16].mxu0 %vm123_vm3, %v2038_v60 }
0x105b   :  { %2711 = vmatprep.mubr.msk.f32.mxu0 %vm2942_vm0, %v2941_v2  ;;  %v1304_v2 = vld [vmem:[#allocation2 + $0x58] sm:$0xff]  ;;  %vm2367_vm0 = vcmask 253952  }
0x105c   :  { %v2765_v38 = vpack.c.bf16 %v1306_v37, %v1304_v2 }
0x105e   :  { %2766 = vmatpush3.bf16.msra.mxu1 %v2765_v38 }
0x105f   :  { %2767 = vmatprep.subr.bf16.mxu1 %v2940_v1 }
0x1062   :  { %2769 = vmatpush3.bf16.msra.mxu1 %v2768_v44 }
0x112d   :  { %v2132_v20 = vpop.f32.mrb[16].mxu0 }
0x112e   :  { %v2133_v21 = vadd.f32 %v2132_v20, %v2046_v19  ;;  %v2691_v22 = vpop.f32.mrb[17].mxu0 }
0x1130   :  { %v2136_v23 = vadd.f32 %v2133_v21, %v3244_v54  ;;  %v2832_v54 = vpack.i.bf16 %v1306_v37, %v1304_v2 }
0x1132   :  { %v2137_v24 = vsel %vm123_vm3, %v2136_v23, 0.0 }
0x1133   :  { %2138 = vadd.xlane.f32.xlu1 %v2137_v24 }
0x1144   :  { %2833 = vrot.lane.b32.xlu1 %v2832_v54, %s2944_s21 }
0x11c0   :  { %v2139_v25 = vpop.xlane.xlu1 %2138 }
0x11c1   :  { %v2140_v26 = vmul.f32 0.03125, %v2139_v25  ;;  %v2365_v25 = vrot.slane %v3250_v55, %v1299_v43 }
0x11c3   :  { %v2141_v27 = vsub.f32 %v2136_v23, %v2140_v26 }
0x11c4   :  { %v2834_v35 = vpop.permute.xlu1 %2833 }
0x11c5   :  { %v2142_v32 = vmul.f32 %v2141_v27, %v2141_v27  ;;  %v2836_v53 = vunpack.i.h.bf16 %v2834_v35  ;;  %v2835_v62 = vunpack.i.l.bf16 %v2834_v35 }
0x11c7   :  { %v2143_v45 = vsel %vm123_vm3, %v2142_v32, 0.0  ;;  %v2771_v63 = vpack.c.bf16 %v2836_v53, %v2835_v62 }
0x11c8   :  { %2144 = vadd.xlane.f32.xlu0 %v2143_v45 }
0x11c9   :  { %2773 = vmatpush3.bf16.xpose.msk.msra.mxu0 %vm3199_vm2, %v2771_v63 }
0x11ca   :  { %2774 = vmatprep.subr.bf16.mxu0 %v2940_v1 }
0x11de   :  { %2838 = vrot.lane.b32.xlu0 %v2837_v46, %s2944_s21 }
0x1255   :  { %v2145_v47 = vpop.xlane.xlu0 %2144 }
0x1256   :  { %v2146_v51 = vmul.f32 0.03125, %v2145_v47 }
0x1258   :  { %v2147_v3 = vadd.f32 1e-12, %v2146_v51 }
0x1259   :  { %v2839_v41 = vpop.permute.xlu0 %2838 }
0x125a   :  { %2882 = vrsqrt.f32 %v2147_v3  ;;  %v2841_v0 = vunpack.i.h.bf16 %v2839_v41  ;;  %v2840_v4 = vunpack.i.l.bf16 %v2839_v41 }
0x125c   :  { %v2775_v5 = vpack.c.bf16 %v2841_v0, %v2840_v4 }
0x125e   :  { %2777 = vmatpush3.bf16.xpose.msk.msra.mxu0 %vm3199_vm2, %v2775_v5 }
0x1264   :  { %v2883_v57 = vpop.eup %2882 }
0x1265   :  { %v2149_v58 = vmul.f32 %v2883_v57, %v2141_v27 }
0x1267   :  { %v2154_v50 = vmul.f32 %v2153_v52, %v2149_v58 }
0x1269   :  { %v2159_v49 = vadd.f32 %v2158_v34, %v2154_v50 }
0x126b   :  { %2701 = vmatmul.mubr.msk.f32.vlgmr.msra.gmra.mrb[18].mxu1 %vm123_vm3, %v2159_v49 }
0x133e   :  { %v2233_v6 = vpop.f32.mrb[18].mxu1 }
0x133f   :  { %v2234_v7 = vadd.f32 %v2233_v6, %v2163_v42  ;;  %v2702_v8 = vpop.f32.mrb[19].mxu1 }
0x1341   :  { %v2237_v28 = vmul.f32 %v2234_v7, %v2234_v7 }
0x1343   :  { %v2238_v29 = vmul.f32 %v2237_v28, %v2234_v7 }
0x1345   :  { %v2239_v17 = vmul.f32 0.044715, %v2238_v29 }
0x1347   :  { %v2240_v59 = vadd.f32 %v2239_v17, %v2234_v7 }
0x1349   :  { %v2241_v33 = vmul.f32 0.7978846, %v2240_v59 }
0x134b   :  { %2884 = vtanh.f32 %v2241_v33 }
0x1355   :  { %v2885_v1 = vpop.eup %2884 }
0x1356   :  { %v2243_v36 = vadd.f32 1.0, %v2885_v1 }
0x1358   :  { %v2244_v31 = vmul.f32 0.5, %v2243_v36 }
0x135a   :  { %v2245_v9 = vmul.f32 %v2244_v31, %v2234_v7 }
0x135c   :  { %2712 = vmatmul.mubr.msk.f32.vlgmr.msra.gmra.mrb[18].mxu0 %vm47_vm1, %v2245_v9 }
0x142f   :  { %v2339_v61 = vpop.f32.mrb[18].mxu0 }
0x1430   :  { %v2340_v10 = vadd.f32 %v2339_v61, %v2249_v30  ;;  %v2713_v11 = vpop.f32.mrb[19].mxu0 }
0x1432   :  { %v2343_v12 = vadd.f32 %v2340_v10, %v2159_v49 }
0x1434   :  { %v2344_v56 = vsel %vm123_vm3, %v2343_v12, 0.0 }
0x1435   :  { %2345 = vadd.xlane.f32.xlu1 %v2344_v56 }
0x14c2   :  { %v2346_v13 = vpop.xlane.xlu1 %2345 }
0x14c3   :  { %v2347_v16 = vmul.f32 0.03125, %v2346_v13 }
0x14c5   :  { %v2348_v60 = vsub.f32 %v2343_v12, %v2347_v16 }
0x14c7   :  { %v2349_v18 = vmul.f32 %v2348_v60, %v2348_v60 }
0x14c9   :  { %v2350_v19 = vsel %vm123_vm3, %v2349_v18, 0.0 }
0x14ca   :  { %2351 = vadd.xlane.f32.xlu0 %v2350_v19 }
0x1557   :  { %v2352_v20 = vpop.xlane.xlu0 %2351 }
0x1558   :  { %v2353_v21 = vmul.f32 0.03125, %v2352_v20 }
0x155a   :  { %v2354_v22 = vadd.f32 1e-12, %v2353_v21 }
0x155c   :  { %2886 = vrsqrt.f32 %v2354_v22 }
0x1566   :  { %v2887_v23 = vpop.eup %2886 }
0x1567   :  { %v2356_v24 = vmul.f32 %v2887_v23, %v2348_v60 }
0x1569   :  { %v2361_v26 = vmul.f32 %v2360_v15, %v2356_v24 }
0x156b   :  { %v2366_v27 = vadd.f32 %v2365_v25, %v2361_v26 }
0x156d   :  { %2368 = vst.msk [vmem:[#allocation5] sm:$0x1] %vm2367_vm0, %v2366_v27 }
0x156e   :  { %2921 = shalt.err (!%p2918_p12)
}
0x156f   :  { %s2922_s29 = scalar_lea.hbm %s3391_s3, 16 }
0x1570   :  { %p2923_p13 = scmp.ne.s32.totalorder %s3391_s3, %s2922_s29  ;;  %p2926_p0 = scmp.lt.u32.totalorder %s2922_s29, %s3391_s3 }
0x1572   :  { %p2928_p1 = pnand %p2926_p0, %p2923_p13 }
0x1574   :  { %2931 = shalt.err (!%p2928_p1)
}
0x1575   :  { %2378 = dma.vmem_to_hbm [thread:$0]  %s2376_s24, 16, %s3391_s3, [#allocation4]  }
0x1576   :  { %2934 = dma.done.wait [#allocation4], 16  }
0x1577   :  { %2935 = vsyncadd [#allocation4], 4294967280 }
0x1578   :  { %2382 = vsyncpa [#allocation3], 1 }
0x1579   :  { %2383 = vsyncpa [#allocation4], 1 }

</bundles_post_ra>
